<compile_context>
chip_gen: v5e
topology: v5e:2x2
jax: 0.10.0
libtpu: 0.0.40
codegen_flags: <defaults>
</compile_context>

<pallas_src>
import functools

import jax
import jax.numpy as jnp
from jax.experimental import pallas as pl
from jax.experimental.pallas import tpu as pltpu


_FUSED_VMEM_BUDGET = 24 * 2**20     # fall back to XLA above this estimated footprint


def _as_pair(v):
    return (v, v) if isinstance(v, int) else tuple(v)


def _round_up(v, m):
    return (v + m - 1) // m * m


def _cdiv(a, b):
    return -(-a // b)


# ---------------------------------------------------------------------------
# Geometry of the sub-pixel phase decomposition of ConvTranspose2d
# ---------------------------------------------------------------------------
def _tconv_geometry(hin, win, kernel_size, stride, padding, output_padding, dilation):
    """Output size, phase-grid size and per-tap (phase, flat offset) placement.

    Tap (kh, kw) at input pixel (iy, ix) contributes to padded-output pixel
    (iy*sH + kh*dH, ix*sW + kw*dW).  In phase coordinates (oy = qy*sH + ry) that is
    phase (ry, rx) = (kh*dH % sH, kw*dW % sW) at (qy, qx) = (iy + qy0, ix + qx0).
    With x zero-padded in W to the phase pitch Wq, the whole tap slab lands at one
    contiguous flat offset qy0*Wq + qx0 of the per-phase (Hacc, Wq) buffer.
    """
    KH, KW = kernel_size
    sH, sW = stride
    pH, pW = padding
    opH, opW = output_padding
    dH, dW = dilation

    Hout = (hin - 1) * sH - 2 * pH + dH * (KH - 1) + opH + 1
    Wout = (win - 1) * sW - 2 * pW + dW * (KW - 1) + opW + 1
    Hq = _cdiv(Hout + 2 * pH, sH)
    Wq = _cdiv(Wout + 2 * pW, sW)

    taps, max_end = [], 0
    for kh in range(KH):
        ry, qy0 = (kh * dH) % sH, (kh * dH) // sH
        for kw in range(KW):
            rx, qx0 = (kw * dW) % sW, (kw * dW) // sW
            off = qy0 * Wq + qx0
            taps.append((ry * sW + rx, off))
            max_end = max(max_end, off + hin * Wq)
    # One extra phase row may be needed because zero-padded slab columns spill into it.
    Hacc = max(Hq, _cdiv(max_end, Wq))
    return Hout, Wout, Wq, Hacc, Hacc * Wq, tuple(taps)


def _vmem_estimate_bytes(cin, kkc, pc, n, lacc, x_itemsize):
    """Conservative VMEM accounting incl. (8,128)/(16,128) layout padding."""
    lane = lambda v: _round_up(max(v, 1), 128)
    sub8 = lambda v: _round_up(max(v, 1), 8)
    w_b = _round_up(kkc, 16) * lane(cin) * 2           # resident bf16 weight block
    x_b = sub8(cin) * lane(n) * x_itemsize             # f32 activation block
    b_b = sub8(pc) * lane(1) * 4                       # resident bias block
    o_b = sub8(pc) * lane(lacc) * 4                    # f32 phase-output block
    u_b = sub8(kkc) * lane(n) * 4                      # in-kernel matmul result
    xc_b = _round_up(cin, 16) * lane(n) * 2            # in-kernel bf16 cast of x
    return 2 * (w_b + x_b + b_b + o_b) + 2 * (u_b + xc_b)


# ---------------------------------------------------------------------------
# Fused Pallas kernel: matmul (MXU) + col2im phase fold + bias, one image per step
# ---------------------------------------------------------------------------
def _fused_tconv_kernel(w_ref, x_ref, b_ref, o_ref, *, taps, cout, slab_len,
                        compute_dtype):
    # w_ref: (KH*KW*Cout, Cin) bf16  (kh,kw-major rows; constant index -> resident)
    # x_ref: (1, Cin, Hin*Wq)  f32   (W already zero-padded to the phase pitch Wq)
    # b_ref: (sH*sW*Cout, 1)   f32
    # o_ref: (1, sH*sW*Cout, Hacc*Wq) f32  (per-phase flat output, pixel-shuffled later)
    xf = x_ref[0].astype(compute_dtype)
    u = jnp.dot(w_ref[...], xf, preferred_element_type=jnp.float32)

    # Fused bias: every final output pixel corresponds to exactly one phase element.
    o_ref[...] = jnp.broadcast_to(b_ref[...][None], o_ref.shape)

    # Fold epilogue: each tap is one contiguous, static-offset add (zero-padded columns
    # of the slab add exact zeros, so no masking is needed).
    for t, (p, off) in enumerate(taps):
        o_ref[0, p * cout:(p + 1) * cout, off:off + slab_len] += (
            u[t * cout:(t + 1) * cout, :])


def _fused_tconv_pallas(w_taps, bias_pc, x_flat, *, taps, cout, lacc,
                        compute_dtype, vmem_est):
    B, cin, n = x_flat.shape
    kkc = w_taps.shape[0]
    pc = bias_pc.shape[0]

    kern = functools.partial(_fused_tconv_kernel, taps=taps, cout=cout,
                             slab_len=n, compute_dtype=compute_dtype)
    vmem_limit = int(min(56 * 2**20, max(2 * vmem_est, 8 * 2**20)))

    return pl.pallas_call(
        kern,
        out_shape=jax.ShapeDtypeStruct((B, pc, lacc), jnp.float32),
        grid_spec=pltpu.PrefetchScalarGridSpec(
            num_scalar_prefetch=0,
            grid=(B,),
            in_specs=[
                pl.BlockSpec((kkc, cin), lambda b: (0, 0)),      # resident weight
                pl.BlockSpec((1, cin, n), lambda b: (b, 0, 0)),  # f32 x, cast in-kernel
                pl.BlockSpec((pc, 1), lambda b: (0, 0)),         # resident bias
            ],
            out_specs=pl.BlockSpec((1, pc, lacc), lambda b: (b, 0, 0)),
        ),
        compiler_params=pltpu.CompilerParams(
            dimension_semantics=("parallel",),
            vmem_limit_bytes=vmem_limit),
    )(w_taps, x_flat, bias_pc)


# ---------------------------------------------------------------------------
# Modules
# ---------------------------------------------------------------------------
class TransposeConv2d:
    """JAX/Pallas port of the PyTorch TransposeConv2d forward pass."""

    def __init__(self, in_channels, out_channels, kernel_size, stride=1,
                 padding=0, output_padding=0, dilation=1, bias=True,
                 compute_dtype=jnp.bfloat16, key=None):
        self.in_channels = in_channels
        self.out_channels = out_channels
        self.kernel_size = _as_pair(kernel_size)
        self.stride = _as_pair(stride)
        self.padding = _as_pair(padding)
        self.output_padding = _as_pair(output_padding)
        self.dilation = _as_pair(dilation)
        self.bias_mode = bias
        self.compute_dtype = compute_dtype       # MXU input dtype; acc always f32

        KH, KW = self.kernel_size
        n = out_channels * KH * KW
        std = n ** (-0.5)
        key = jax.random.PRNGKey(0) if key is None else key
        kw_, kb_ = jax.random.split(key)
        self.weight = jax.random.uniform(
            kw_, (in_channels, out_channels, KH, KW),
            minval=-std, maxval=std, dtype=jnp.float32)
        self.bias = jax.random.uniform(
            kb_, (out_channels,), minval=-std, maxval=std, dtype=jnp.float32)

        # Cached once at init: (kh, kw, cout)-major rows, compute dtype -> per-tap row
        # blocks are contiguous static slices inside the kernel.
        self._w_taps = (self.weight.transpose(2, 3, 1, 0)
                        .reshape(KH * KW * out_channels, in_channels)
                        .astype(compute_dtype))
        P = self.stride[0] * self.stride[1]
        b_src = self.bias if bias else jnp.zeros((out_channels,), jnp.float32)
        self._bias_pc = jnp.tile(b_src, P).reshape(P * out_channels, 1).astype(jnp.float32)

    def __call__(self, x):
        return self.forward(x)

    def param(self):
        return [self.weight, self.bias] if self.bias_mode else [self.weight]

    def forward(self, x):
        B, Cin, Hin, Win = x.shape
        KH, KW = self.kernel_size
        sH, sW = self.stride
        pH, pW = self.padding
        Cout = self.out_channels

        Hout, Wout, Wq, Hacc, Lacc, taps = _tconv_geometry(
            Hin, Win, self.kernel_size, self.stride, self.padding,
            self.output_padding, self.dilation)

        kkc = KH * KW * Cout
        pc = sH * sW * Cout
        n = Hin * Wq
        est = _vmem_estimate_bytes(Cin, kkc, pc, n, Lacc,
                                   jnp.dtype(x.dtype).itemsize)
        if est > _FUSED_VMEM_BUDGET:
            # TODO(synk): spatially-tiled fused kernel for very large Hin*Win (needs
            # revisit-safe overlapping output blocks); use the XLA path until then.
            return _reference_layer(self, x)

        # Zero-pad W to the phase pitch Wq (input-sized, tiny vs. the removed unfolded
        # writeback); the reshape below is metadata-only.
        xp = x if Wq == Win else jnp.pad(x, ((0, 0), (0, 0), (0, 0), (0, Wq - Win)))
        x_flat = xp.reshape(B, Cin, n)

        phases = _fused_tconv_pallas(self._w_taps, self._bias_pc, x_flat,
                                     taps=taps, cout=Cout, lacc=Lacc,
                                     compute_dtype=self.compute_dtype, vmem_est=est)

        # Output-sized epilogue: pixel-shuffle the phases and crop the conv padding.
        ph = phases.reshape(B, sH, sW, Cout, Hacc, Wq)
        out_pad = ph.transpose(0, 3, 4, 1, 5, 2).reshape(B, Cout, Hacc * sH, Wq * sW)
        return out_pad[:, :, pH:pH + Hout, pW:pW + Wout]


class Sequential:
    """JAX port of the miniproject Sequential: chains the layers' forwards.
    (JAX arrays are immutable, so no clone().detach() is needed.)"""

    def __init__(self, *layers):
        self.layers = layers
        self.parameters = self.param()

    def __call__(self, x):
        return self.forward(x)

    def forward(self, x):
        for m in self.layers:
            x = m(x)
        return x

    def param(self):
        return [m.param() for m in self.layers]


# ---------------------------------------------------------------------------
# Pure-jnp reference (strided-scatter fold), also used as the large-shape fallback
# ---------------------------------------------------------------------------
def _reference_layer(mod, x):
    B, Cin, Hin, Win = x.shape
    KH, KW = mod.kernel_size
    sH, sW = mod.stride
    pH, pW = mod.padding
    opH, opW = mod.output_padding
    dH, dW = mod.dilation
    Cout = mod.out_channels
    Hout = (Hin - 1) * sH - 2 * pH + dH * (KH - 1) + opH + 1
    Wout = (Win - 1) * sW - 2 * pW + dW * (KW - 1) + opW + 1

    xf = x.reshape(B, Cin, Hin * Win).astype(mod.compute_dtype)
    u = jnp.einsum('kc,bcl->bkl', mod._w_taps, xf,
                   preferred_element_type=jnp.float32)
    cols = u.reshape(B, KH, KW, Cout, Hin, Win)
    out_pad = jnp.zeros((B, Cout, Hout + 2 * pH, Wout + 2 * pW), jnp.float32)
    for kh in range(KH):
        for kw in range(KW):
            out_pad = out_pad.at[
                :, :, kh * dH: kh * dH + sH * Hin: sH,
                kw * dW: kw * dW + sW * Win: sW].add(cols[:, kh, kw])
    out = out_pad[:, :, pH:pH + Hout, pW:pW + Wout]
    if mod.bias_mode:
        out = out + mod.bias.reshape(1, -1, 1, 1)
    return out


def _reference_forward(model, x):
    for m in model.layers:
        x = _reference_layer(m, x)
    return x


if __name__ == "__main__":
    root = jax.random.PRNGKey(0)
    k_x, k_l1, k_l2 = jax.random.split(root, 3)

    x = jax.random.normal(k_x, (2, 4, 16, 16), dtype=jnp.float32)

    model = Sequential(
        TransposeConv2d(4, 8, kernel_size=3, stride=2, padding=1,
                        output_padding=1, dilation=1, bias=True, key=k_l1),
        TransposeConv2d(8, 4, kernel_size=3, stride=2, padding=1,
                        output_padding=1, dilation=1, bias=True, key=k_l2),
    )

    # Run the full (jitted) forward once and block on it.
    fwd = jax.jit(model.forward)
    out = jax.block_until_ready(fwd(x))
    assert out.shape == (2, 4, 64, 64), out.shape

    # Per-layer check against the plain-jnp reference (same bf16-cast inputs on both
    # paths -> tight tolerance).
    xi = x
    for m in model.layers:
        y_kernel = jax.block_until_ready(m(xi))
        y_ref = _reference_layer(m, xi)
        err = float(jnp.max(jnp.abs(y_kernel - y_ref)))
        assert jnp.allclose(y_kernel, y_ref, atol=1e-4, rtol=1e-4), err
        xi = y_kernel

    # End-to-end check (the in-kernel bf16 cast of the f32 layer-1 activations can round
    # differently by one ulp between the two paths, so keep a bf16-appropriate tolerance).
    ref = _reference_forward(model, x)
    err = float(jnp.max(jnp.abs(out - ref)))
    assert jnp.allclose(out, ref, atol=5e-2, rtol=5e-2), err

    print("KERNEL_OK")
</pallas_src>

<mosaic_0001>
module attributes {stable_mosaic.version = 11 : i64} {
  func.func @_fused_tconv_kernel(%arg0: i32, %arg1: memref<72x4xbf16, #tpu.memory_space<vmem>>, %arg2: memref<1x4x272xf32, #tpu.memory_space<vmem>>, %arg3: memref<32x1xf32, #tpu.memory_space<vmem>>, %arg4: memref<1x32x306xf32, #tpu.memory_space<vmem>>) attributes {dimension_semantics = [#tpu.dimension_semantics<parallel>], iteration_bounds = array<i64: 2>, scalar_prefetch = 0 : i64, scratch_operands = 0 : i64, tpu.core_type = #tpu.core_type<tc>, window_params = [{pipeline_mode = #tpu.pipeline_mode<synchronous>, transform_indices = @transform_0, window_bounds = array<i64: 72, 4>}, {transform_indices = @transform_1, window_bounds = array<i64: 1, 4, 272>}, {pipeline_mode = #tpu.pipeline_mode<synchronous>, transform_indices = @transform_2, window_bounds = array<i64: 32, 1>}, {transform_indices = @transform_3, window_bounds = array<i64: 1, 32, 306>}]} {
    %c0 = arith.constant 0 : index
    %c0_0 = arith.constant 0 : index
    %c0_1 = arith.constant 0 : index
    %0 = vector.load %arg2[%c0, %c0_0, %c0_1] : memref<1x4x272xf32, #tpu.memory_space<vmem>>, vector<1x4x272xf32>
    %1 = vector.shape_cast %0 : vector<1x4x272xf32> to vector<4x272xf32>
    %2 = arith.truncf %1 : vector<4x272xf32> to vector<4x272xbf16>
    %c0_2 = arith.constant 0 : index
    %c0_3 = arith.constant 0 : index
    %3 = vector.load %arg1[%c0_2, %c0_3] : memref<72x4xbf16, #tpu.memory_space<vmem>>, vector<72x4xbf16>
    %cst = arith.constant dense<0.000000e+00> : vector<72x272xf32>
    %4 = tpu.matmul %3, %2, %cst {dimension_numbers = #tpu.dot_dimension_numbers<[1], [0], [0], [1], [0, 0, 1, 1], [], []>} : vector<72x4xbf16>, vector<4x272xbf16>, vector<72x272xf32> -> vector<72x272xf32>
    %c0_4 = arith.constant 0 : index
    %c0_5 = arith.constant 0 : index
    %5 = vector.load %arg3[%c0_4, %c0_5] : memref<32x1xf32, #tpu.memory_space<vmem>>, vector<32x1xf32>
    %6 = vector.shape_cast %5 : vector<32x1xf32> to vector<1x32x1xf32>
    %7 = vector.shape_cast %6 : vector<1x32x1xf32> to vector<1x32x1xf32>
    %8 = vector.broadcast %7 : vector<1x32x1xf32> to vector<1x32x306xf32>
    %c0_6 = arith.constant 0 : index
    %c0_7 = arith.constant 0 : index
    %c0_8 = arith.constant 0 : index
    %9 = vector.load %arg4[%c0_6, %c0_7, %c0_8] : memref<1x32x306xf32, #tpu.memory_space<vmem>>, vector<1x32x306xf32>
    tpu.vector_store %arg4[%c0_6, %c0_7, %c0_8], %8 {strides = array<i32>} : memref<1x32x306xf32, #tpu.memory_space<vmem>>, vector<1x32x306xf32>,
    %c0_9 = arith.constant 0 : index
    %c0_10 = arith.constant 0 : index
    %c0_11 = arith.constant 0 : index
    %10 = vector.load %arg4[%c0_9, %c0_10, %c0_11] : memref<1x32x306xf32, #tpu.memory_space<vmem>>, vector<1x8x272xf32>
    %11 = vector.shape_cast %10 : vector<1x8x272xf32> to vector<8x272xf32>
    %12 = vector.extract_strided_slice %4 {offsets = [0, 0], sizes = [8, 272], strides = [1, 1]} : vector<72x272xf32> to vector<8x272xf32>
    %13 = arith.addf %11, %12 : vector<8x272xf32>
    %c0_12 = arith.constant 0 : index
    %c0_13 = arith.constant 0 : index
    %c0_14 = arith.constant 0 : index
    %14 = vector.load %arg4[%c0_12, %c0_13, %c0_14] : memref<1x32x306xf32, #tpu.memory_space<vmem>>, vector<1x8x272xf32>
    %15 = vector.shape_cast %14 : vector<1x8x272xf32> to vector<8x272xf32>
    %16 = vector.shape_cast %13 : vector<8x272xf32> to vector<1x8x272xf32>
    tpu.vector_store %arg4[%c0_12, %c0_13, %c0_14], %16 {strides = array<i32>} : memref<1x32x306xf32, #tpu.memory_space<vmem>>, vector<1x8x272xf32>,
    %c0_15 = arith.constant 0 : index
    %c8 = arith.constant 8 : index
    %c0_16 = arith.constant 0 : index
    %17 = vector.load %arg4[%c0_15, %c8, %c0_16] : memref<1x32x306xf32, #tpu.memory_space<vmem>>, vector<1x8x272xf32>
    %18 = vector.shape_cast %17 : vector<1x8x272xf32> to vector<8x272xf32>
    %19 = vector.extract_strided_slice %4 {offsets = [8, 0], sizes = [8, 272], strides = [1, 1]} : vector<72x272xf32> to vector<8x272xf32>
    %20 = arith.addf %18, %19 : vector<8x272xf32>
    %c0_17 = arith.constant 0 : index
    %c8_18 = arith.constant 8 : index
    %c0_19 = arith.constant 0 : index
    %21 = vector.load %arg4[%c0_17, %c8_18, %c0_19] : memref<1x32x306xf32, #tpu.memory_space<vmem>>, vector<1x8x272xf32>
    %22 = vector.shape_cast %21 : vector<1x8x272xf32> to vector<8x272xf32>
    %23 = vector.shape_cast %20 : vector<8x272xf32> to vector<1x8x272xf32>
    tpu.vector_store %arg4[%c0_17, %c8_18, %c0_19], %23 {strides = array<i32>} : memref<1x32x306xf32, #tpu.memory_space<vmem>>, vector<1x8x272xf32>,
    %c0_20 = arith.constant 0 : index
    %c0_21 = arith.constant 0 : index
    %c1 = arith.constant 1 : index
    %24 = vector.load %arg4[%c0_20, %c0_21, %c1] : memref<1x32x306xf32, #tpu.memory_space<vmem>>, vector<1x8x272xf32>
    %25 = vector.shape_cast %24 : vector<1x8x272xf32> to vector<8x272xf32>
    %26 = vector.extract_strided_slice %4 {offsets = [16, 0], sizes = [8, 272], strides = [1, 1]} : vector<72x272xf32> to vector<8x272xf32>
    %27 = arith.addf %25, %26 : vector<8x272xf32>
    %c0_22 = arith.constant 0 : index
    %c0_23 = arith.constant 0 : index
    %c1_24 = arith.constant 1 : index
    %28 = vector.load %arg4[%c0_22, %c0_23, %c1_24] : memref<1x32x306xf32, #tpu.memory_space<vmem>>, vector<1x8x272xf32>
    %29 = vector.shape_cast %28 : vector<1x8x272xf32> to vector<8x272xf32>
    %30 = vector.shape_cast %27 : vector<8x272xf32> to vector<1x8x272xf32>
    tpu.vector_store %arg4[%c0_22, %c0_23, %c1_24], %30 {strides = array<i32>} : memref<1x32x306xf32, #tpu.memory_space<vmem>>, vector<1x8x272xf32>,
    %c0_25 = arith.constant 0 : index
    %c16 = arith.constant 16 : index
    %c0_26 = arith.constant 0 : index
    %31 = vector.load %arg4[%c0_25, %c16, %c0_26] : memref<1x32x306xf32, #tpu.memory_space<vmem>>, vector<1x8x272xf32>
    %32 = vector.shape_cast %31 : vector<1x8x272xf32> to vector<8x272xf32>
    %33 = vector.extract_strided_slice %4 {offsets = [24, 0], sizes = [8, 272], strides = [1, 1]} : vector<72x272xf32> to vector<8x272xf32>
    %34 = arith.addf %32, %33 : vector<8x272xf32>
    %c0_27 = arith.constant 0 : index
    %c16_28 = arith.constant 16 : index
    %c0_29 = arith.constant 0 : index
    %35 = vector.load %arg4[%c0_27, %c16_28, %c0_29] : memref<1x32x306xf32, #tpu.memory_space<vmem>>, vector<1x8x272xf32>
    %36 = vector.shape_cast %35 : vector<1x8x272xf32> to vector<8x272xf32>
    %37 = vector.shape_cast %34 : vector<8x272xf32> to vector<1x8x272xf32>
    tpu.vector_store %arg4[%c0_27, %c16_28, %c0_29], %37 {strides = array<i32>} : memref<1x32x306xf32, #tpu.memory_space<vmem>>, vector<1x8x272xf32>,
    %c0_30 = arith.constant 0 : index
    %c24 = arith.constant 24 : index
    %c0_31 = arith.constant 0 : index
    %38 = vector.load %arg4[%c0_30, %c24, %c0_31] : memref<1x32x306xf32, #tpu.memory_space<vmem>>, vector<1x8x272xf32>
    %39 = vector.shape_cast %38 : vector<1x8x272xf32> to vector<8x272xf32>
    %40 = vector.extract_strided_slice %4 {offsets = [32, 0], sizes = [8, 272], strides = [1, 1]} : vector<72x272xf32> to vector<8x272xf32>
    %41 = arith.addf %39, %40 : vector<8x272xf32>
    %c0_32 = arith.constant 0 : index
    %c24_33 = arith.constant 24 : index
    %c0_34 = arith.constant 0 : index
    %42 = vector.load %arg4[%c0_32, %c24_33, %c0_34] : memref<1x32x306xf32, #tpu.memory_space<vmem>>, vector<1x8x272xf32>
    %43 = vector.shape_cast %42 : vector<1x8x272xf32> to vector<8x272xf32>
    %44 = vector.shape_cast %41 : vector<8x272xf32> to vector<1x8x272xf32>
    tpu.vector_store %arg4[%c0_32, %c24_33, %c0_34], %44 {strides = array<i32>} : memref<1x32x306xf32, #tpu.memory_space<vmem>>, vector<1x8x272xf32>,
    %c0_35 = arith.constant 0 : index
    %c16_36 = arith.constant 16 : index
    %c1_37 = arith.constant 1 : index
    %45 = vector.load %arg4[%c0_35, %c16_36, %c1_37] : memref<1x32x306xf32, #tpu.memory_space<vmem>>, vector<1x8x272xf32>
    %46 = vector.shape_cast %45 : vector<1x8x272xf32> to vector<8x272xf32>
    %47 = vector.extract_strided_slice %4 {offsets = [40, 0], sizes = [8, 272], strides = [1, 1]} : vector<72x272xf32> to vector<8x272xf32>
    %48 = arith.addf %46, %47 : vector<8x272xf32>
    %c0_38 = arith.constant 0 : index
    %c16_39 = arith.constant 16 : index
    %c1_40 = arith.constant 1 : index
    %49 = vector.load %arg4[%c0_38, %c16_39, %c1_40] : memref<1x32x306xf32, #tpu.memory_space<vmem>>, vector<1x8x272xf32>
    %50 = vector.shape_cast %49 : vector<1x8x272xf32> to vector<8x272xf32>
    %51 = vector.shape_cast %48 : vector<8x272xf32> to vector<1x8x272xf32>
    tpu.vector_store %arg4[%c0_38, %c16_39, %c1_40], %51 {strides = array<i32>} : memref<1x32x306xf32, #tpu.memory_space<vmem>>, vector<1x8x272xf32>,
    %c0_41 = arith.constant 0 : index
    %c0_42 = arith.constant 0 : index
    %c17 = arith.constant 17 : index
    %52 = vector.load %arg4[%c0_41, %c0_42, %c17] : memref<1x32x306xf32, #tpu.memory_space<vmem>>, vector<1x8x272xf32>
    %53 = vector.shape_cast %52 : vector<1x8x272xf32> to vector<8x272xf32>
    %54 = vector.extract_strided_slice %4 {offsets = [48, 0], sizes = [8, 272], strides = [1, 1]} : vector<72x272xf32> to vector<8x272xf32>
    %55 = arith.addf %53, %54 : vector<8x272xf32>
    %c0_43 = arith.constant 0 : index
    %c0_44 = arith.constant 0 : index
    %c17_45 = arith.constant 17 : index
    %56 = vector.load %arg4[%c0_43, %c0_44, %c17_45] : memref<1x32x306xf32, #tpu.memory_space<vmem>>, vector<1x8x272xf32>
    %57 = vector.shape_cast %56 : vector<1x8x272xf32> to vector<8x272xf32>
    %58 = vector.shape_cast %55 : vector<8x272xf32> to vector<1x8x272xf32>
    tpu.vector_store %arg4[%c0_43, %c0_44, %c17_45], %58 {strides = array<i32>} : memref<1x32x306xf32, #tpu.memory_space<vmem>>, vector<1x8x272xf32>,
    %c0_46 = arith.constant 0 : index
    %c8_47 = arith.constant 8 : index
    %c17_48 = arith.constant 17 : index
    %59 = vector.load %arg4[%c0_46, %c8_47, %c17_48] : memref<1x32x306xf32, #tpu.memory_space<vmem>>, vector<1x8x272xf32>
    %60 = vector.shape_cast %59 : vector<1x8x272xf32> to vector<8x272xf32>
    %61 = vector.extract_strided_slice %4 {offsets = [56, 0], sizes = [8, 272], strides = [1, 1]} : vector<72x272xf32> to vector<8x272xf32>
    %62 = arith.addf %60, %61 : vector<8x272xf32>
    %c0_49 = arith.constant 0 : index
    %c8_50 = arith.constant 8 : index
    %c17_51 = arith.constant 17 : index
    %63 = vector.load %arg4[%c0_49, %c8_50, %c17_51] : memref<1x32x306xf32, #tpu.memory_space<vmem>>, vector<1x8x272xf32>
    %64 = vector.shape_cast %63 : vector<1x8x272xf32> to vector<8x272xf32>
    %65 = vector.shape_cast %62 : vector<8x272xf32> to vector<1x8x272xf32>
    tpu.vector_store %arg4[%c0_49, %c8_50, %c17_51], %65 {strides = array<i32>} : memref<1x32x306xf32, #tpu.memory_space<vmem>>, vector<1x8x272xf32>,
    %c0_52 = arith.constant 0 : index
    %c0_53 = arith.constant 0 : index
    %c18 = arith.constant 18 : index
    %66 = vector.load %arg4[%c0_52, %c0_53, %c18] : memref<1x32x306xf32, #tpu.memory_space<vmem>>, vector<1x8x272xf32>
    %67 = vector.shape_cast %66 : vector<1x8x272xf32> to vector<8x272xf32>
    %68 = vector.extract_strided_slice %4 {offsets = [64, 0], sizes = [8, 272], strides = [1, 1]} : vector<72x272xf32> to vector<8x272xf32>
    %69 = arith.addf %67, %68 : vector<8x272xf32>
    %c0_54 = arith.constant 0 : index
    %c0_55 = arith.constant 0 : index
    %c18_56 = arith.constant 18 : index
    %70 = vector.load %arg4[%c0_54, %c0_55, %c18_56] : memref<1x32x306xf32, #tpu.memory_space<vmem>>, vector<1x8x272xf32>
    %71 = vector.shape_cast %70 : vector<1x8x272xf32> to vector<8x272xf32>
    %72 = vector.shape_cast %69 : vector<8x272xf32> to vector<1x8x272xf32>
    tpu.vector_store %arg4[%c0_54, %c0_55, %c18_56], %72 {strides = array<i32>} : memref<1x32x306xf32, #tpu.memory_space<vmem>>, vector<1x8x272xf32>,
    return
  }
  func.func @transform_0(%arg0: i32) -> (i32, i32) {
    %c0_i32 = arith.constant 0 : i32
    %c0_i32_0 = arith.constant 0 : i32
    %c0_i32_1 = arith.constant 0 : i32
    return %c0_i32, %c0_i32_0 : i32, i32
  }
  func.func @transform_1(%arg0: i32) -> (i32, i32, i32) {
    %c0_i32 = arith.constant 0 : i32
    %c0_i32_0 = arith.constant 0 : i32
    %c0_i32_1 = arith.constant 0 : i32
    return %arg0, %c0_i32, %c0_i32_0 : i32, i32, i32
  }
  func.func @transform_2(%arg0: i32) -> (i32, i32) {
    %c0_i32 = arith.constant 0 : i32
    %c0_i32_0 = arith.constant 0 : i32
    %c0_i32_1 = arith.constant 0 : i32
    return %c0_i32, %c0_i32_0 : i32, i32
  }
  func.func @transform_3(%arg0: i32) -> (i32, i32, i32) {
    %c0_i32 = arith.constant 0 : i32
    %c0_i32_0 = arith.constant 0 : i32
    %c0_i32_1 = arith.constant 0 : i32
    return %arg0, %c0_i32, %c0_i32_0 : i32, i32, i32
  }
}

module attributes {stable_mosaic.version = 11 : i64} {
  func.func @_fused_tconv_kernel(%arg0: i32, %arg1: memref<36x8xbf16, #tpu.memory_space<vmem>>, %arg2: memref<1x8x1056xf32, #tpu.memory_space<vmem>>, %arg3: memref<16x1xf32, #tpu.memory_space<vmem>>, %arg4: memref<1x16x1122xf32, #tpu.memory_space<vmem>>) attributes {dimension_semantics = [#tpu.dimension_semantics<parallel>], iteration_bounds = array<i64: 2>, scalar_prefetch = 0 : i64, scratch_operands = 0 : i64, tpu.core_type = #tpu.core_type<tc>, window_params = [{pipeline_mode = #tpu.pipeline_mode<synchronous>, transform_indices = @transform_0, window_bounds = array<i64: 36, 8>}, {transform_indices = @transform_1, window_bounds = array<i64: 1, 8, 1056>}, {pipeline_mode = #tpu.pipeline_mode<synchronous>, transform_indices = @transform_2, window_bounds = array<i64: 16, 1>}, {transform_indices = @transform_3, window_bounds = array<i64: 1, 16, 1122>}]} {
    %c0 = arith.constant 0 : index
    %c0_0 = arith.constant 0 : index
    %c0_1 = arith.constant 0 : index
    %0 = vector.load %arg2[%c0, %c0_0, %c0_1] : memref<1x8x1056xf32, #tpu.memory_space<vmem>>, vector<1x8x1056xf32>
    %1 = vector.shape_cast %0 : vector<1x8x1056xf32> to vector<8x1056xf32>
    %2 = arith.truncf %1 : vector<8x1056xf32> to vector<8x1056xbf16>
    %c0_2 = arith.constant 0 : index
    %c0_3 = arith.constant 0 : index
    %3 = vector.load %arg1[%c0_2, %c0_3] : memref<36x8xbf16, #tpu.memory_space<vmem>>, vector<36x8xbf16>
    %cst = arith.constant dense<0.000000e+00> : vector<36x1056xf32>
    %4 = tpu.matmul %3, %2, %cst {dimension_numbers = #tpu.dot_dimension_numbers<[1], [0], [0], [1], [0, 0, 1, 1], [], []>} : vector<36x8xbf16>, vector<8x1056xbf16>, vector<36x1056xf32> -> vector<36x1056xf32>
    %c0_4 = arith.constant 0 : index
    %c0_5 = arith.constant 0 : index
    %5 = vector.load %arg3[%c0_4, %c0_5] : memref<16x1xf32, #tpu.memory_space<vmem>>, vector<16x1xf32>
    %6 = vector.shape_cast %5 : vector<16x1xf32> to vector<1x16x1xf32>
    %7 = vector.shape_cast %6 : vector<1x16x1xf32> to vector<1x16x1xf32>
    %8 = vector.broadcast %7 : vector<1x16x1xf32> to vector<1x16x1122xf32>
    %c0_6 = arith.constant 0 : index
    %c0_7 = arith.constant 0 : index
    %c0_8 = arith.constant 0 : index
    %9 = vector.load %arg4[%c0_6, %c0_7, %c0_8] : memref<1x16x1122xf32, #tpu.memory_space<vmem>>, vector<1x16x1122xf32>
    tpu.vector_store %arg4[%c0_6, %c0_7, %c0_8], %8 {strides = array<i32>} : memref<1x16x1122xf32, #tpu.memory_space<vmem>>, vector<1x16x1122xf32>,
    %c0_9 = arith.constant 0 : index
    %c0_10 = arith.constant 0 : index
    %c0_11 = arith.constant 0 : index
    %10 = vector.load %arg4[%c0_9, %c0_10, %c0_11] : memref<1x16x1122xf32, #tpu.memory_space<vmem>>, vector<1x4x1056xf32>
    %11 = vector.shape_cast %10 : vector<1x4x1056xf32> to vector<4x1056xf32>
    %12 = vector.extract_strided_slice %4 {offsets = [0, 0], sizes = [4, 1056], strides = [1, 1]} : vector<36x1056xf32> to vector<4x1056xf32>
    %13 = arith.addf %11, %12 : vector<4x1056xf32>
    %c0_12 = arith.constant 0 : index
    %c0_13 = arith.constant 0 : index
    %c0_14 = arith.constant 0 : index
    %14 = vector.load %arg4[%c0_12, %c0_13, %c0_14] : memref<1x16x1122xf32, #tpu.memory_space<vmem>>, vector<1x4x1056xf32>
    %15 = vector.shape_cast %14 : vector<1x4x1056xf32> to vector<4x1056xf32>
    %16 = vector.shape_cast %13 : vector<4x1056xf32> to vector<1x4x1056xf32>
    tpu.vector_store %arg4[%c0_12, %c0_13, %c0_14], %16 {strides = array<i32>} : memref<1x16x1122xf32, #tpu.memory_space<vmem>>, vector<1x4x1056xf32>,
    %c0_15 = arith.constant 0 : index
    %c4 = arith.constant 4 : index
    %c0_16 = arith.constant 0 : index
    %17 = vector.load %arg4[%c0_15, %c4, %c0_16] : memref<1x16x1122xf32, #tpu.memory_space<vmem>>, vector<1x4x1056xf32>
    %18 = vector.shape_cast %17 : vector<1x4x1056xf32> to vector<4x1056xf32>
    %19 = vector.extract_strided_slice %4 {offsets = [4, 0], sizes = [4, 1056], strides = [1, 1]} : vector<36x1056xf32> to vector<4x1056xf32>
    %20 = arith.addf %18, %19 : vector<4x1056xf32>
    %c0_17 = arith.constant 0 : index
    %c4_18 = arith.constant 4 : index
    %c0_19 = arith.constant 0 : index
    %21 = vector.load %arg4[%c0_17, %c4_18, %c0_19] : memref<1x16x1122xf32, #tpu.memory_space<vmem>>, vector<1x4x1056xf32>
    %22 = vector.shape_cast %21 : vector<1x4x1056xf32> to vector<4x1056xf32>
    %23 = vector.shape_cast %20 : vector<4x1056xf32> to vector<1x4x1056xf32>
    tpu.vector_store %arg4[%c0_17, %c4_18, %c0_19], %23 {strides = array<i32>} : memref<1x16x1122xf32, #tpu.memory_space<vmem>>, vector<1x4x1056xf32>,
    %c0_20 = arith.constant 0 : index
    %c0_21 = arith.constant 0 : index
    %c1 = arith.constant 1 : index
    %24 = vector.load %arg4[%c0_20, %c0_21, %c1] : memref<1x16x1122xf32, #tpu.memory_space<vmem>>, vector<1x4x1056xf32>
    %25 = vector.shape_cast %24 : vector<1x4x1056xf32> to vector<4x1056xf32>
    %26 = vector.extract_strided_slice %4 {offsets = [8, 0], sizes = [4, 1056], strides = [1, 1]} : vector<36x1056xf32> to vector<4x1056xf32>
    %27 = arith.addf %25, %26 : vector<4x1056xf32>
    %c0_22 = arith.constant 0 : index
    %c0_23 = arith.constant 0 : index
    %c1_24 = arith.constant 1 : index
    %28 = vector.load %arg4[%c0_22, %c0_23, %c1_24] : memref<1x16x1122xf32, #tpu.memory_space<vmem>>, vector<1x4x1056xf32>
    %29 = vector.shape_cast %28 : vector<1x4x1056xf32> to vector<4x1056xf32>
    %30 = vector.shape_cast %27 : vector<4x1056xf32> to vector<1x4x1056xf32>
    tpu.vector_store %arg4[%c0_22, %c0_23, %c1_24], %30 {strides = array<i32>} : memref<1x16x1122xf32, #tpu.memory_space<vmem>>, vector<1x4x1056xf32>,
    %c0_25 = arith.constant 0 : index
    %c8 = arith.constant 8 : index
    %c0_26 = arith.constant 0 : index
    %31 = vector.load %arg4[%c0_25, %c8, %c0_26] : memref<1x16x1122xf32, #tpu.memory_space<vmem>>, vector<1x4x1056xf32>
    %32 = vector.shape_cast %31 : vector<1x4x1056xf32> to vector<4x1056xf32>
    %33 = vector.extract_strided_slice %4 {offsets = [12, 0], sizes = [4, 1056], strides = [1, 1]} : vector<36x1056xf32> to vector<4x1056xf32>
    %34 = arith.addf %32, %33 : vector<4x1056xf32>
    %c0_27 = arith.constant 0 : index
    %c8_28 = arith.constant 8 : index
    %c0_29 = arith.constant 0 : index
    %35 = vector.load %arg4[%c0_27, %c8_28, %c0_29] : memref<1x16x1122xf32, #tpu.memory_space<vmem>>, vector<1x4x1056xf32>
    %36 = vector.shape_cast %35 : vector<1x4x1056xf32> to vector<4x1056xf32>
    %37 = vector.shape_cast %34 : vector<4x1056xf32> to vector<1x4x1056xf32>
    tpu.vector_store %arg4[%c0_27, %c8_28, %c0_29], %37 {strides = array<i32>} : memref<1x16x1122xf32, #tpu.memory_space<vmem>>, vector<1x4x1056xf32>,
    %c0_30 = arith.constant 0 : index
    %c12 = arith.constant 12 : index
    %c0_31 = arith.constant 0 : index
    %38 = vector.load %arg4[%c0_30, %c12, %c0_31] : memref<1x16x1122xf32, #tpu.memory_space<vmem>>, vector<1x4x1056xf32>
    %39 = vector.shape_cast %38 : vector<1x4x1056xf32> to vector<4x1056xf32>
    %40 = vector.extract_strided_slice %4 {offsets = [16, 0], sizes = [4, 1056], strides = [1, 1]} : vector<36x1056xf32> to vector<4x1056xf32>
    %41 = arith.addf %39, %40 : vector<4x1056xf32>
    %c0_32 = arith.constant 0 : index
    %c12_33 = arith.constant 12 : index
    %c0_34 = arith.constant 0 : index
    %42 = vector.load %arg4[%c0_32, %c12_33, %c0_34] : memref<1x16x1122xf32, #tpu.memory_space<vmem>>, vector<1x4x1056xf32>
    %43 = vector.shape_cast %42 : vector<1x4x1056xf32> to vector<4x1056xf32>
    %44 = vector.shape_cast %41 : vector<4x1056xf32> to vector<1x4x1056xf32>
    tpu.vector_store %arg4[%c0_32, %c12_33, %c0_34], %44 {strides = array<i32>} : memref<1x16x1122xf32, #tpu.memory_space<vmem>>, vector<1x4x1056xf32>,
    %c0_35 = arith.constant 0 : index
    %c8_36 = arith.constant 8 : index
    %c1_37 = arith.constant 1 : index
    %45 = vector.load %arg4[%c0_35, %c8_36, %c1_37] : memref<1x16x1122xf32, #tpu.memory_space<vmem>>, vector<1x4x1056xf32>
    %46 = vector.shape_cast %45 : vector<1x4x1056xf32> to vector<4x1056xf32>
    %47 = vector.extract_strided_slice %4 {offsets = [20, 0], sizes = [4, 1056], strides = [1, 1]} : vector<36x1056xf32> to vector<4x1056xf32>
    %48 = arith.addf %46, %47 : vector<4x1056xf32>
    %c0_38 = arith.constant 0 : index
    %c8_39 = arith.constant 8 : index
    %c1_40 = arith.constant 1 : index
    %49 = vector.load %arg4[%c0_38, %c8_39, %c1_40] : memref<1x16x1122xf32, #tpu.memory_space<vmem>>, vector<1x4x1056xf32>
    %50 = vector.shape_cast %49 : vector<1x4x1056xf32> to vector<4x1056xf32>
    %51 = vector.shape_cast %48 : vector<4x1056xf32> to vector<1x4x1056xf32>
    tpu.vector_store %arg4[%c0_38, %c8_39, %c1_40], %51 {strides = array<i32>} : memref<1x16x1122xf32, #tpu.memory_space<vmem>>, vector<1x4x1056xf32>,
    %c0_41 = arith.constant 0 : index
    %c0_42 = arith.constant 0 : index
    %c33 = arith.constant 33 : index
    %52 = vector.load %arg4[%c0_41, %c0_42, %c33] : memref<1x16x1122xf32, #tpu.memory_space<vmem>>, vector<1x4x1056xf32>
    %53 = vector.shape_cast %52 : vector<1x4x1056xf32> to vector<4x1056xf32>
    %54 = vector.extract_strided_slice %4 {offsets = [24, 0], sizes = [4, 1056], strides = [1, 1]} : vector<36x1056xf32> to vector<4x1056xf32>
    %55 = arith.addf %53, %54 : vector<4x1056xf32>
    %c0_43 = arith.constant 0 : index
    %c0_44 = arith.constant 0 : index
    %c33_45 = arith.constant 33 : index
    %56 = vector.load %arg4[%c0_43, %c0_44, %c33_45] : memref<1x16x1122xf32, #tpu.memory_space<vmem>>, vector<1x4x1056xf32>
    %57 = vector.shape_cast %56 : vector<1x4x1056xf32> to vector<4x1056xf32>
    %58 = vector.shape_cast %55 : vector<4x1056xf32> to vector<1x4x1056xf32>
    tpu.vector_store %arg4[%c0_43, %c0_44, %c33_45], %58 {strides = array<i32>} : memref<1x16x1122xf32, #tpu.memory_space<vmem>>, vector<1x4x1056xf32>,
    %c0_46 = arith.constant 0 : index
    %c4_47 = arith.constant 4 : index
    %c33_48 = arith.constant 33 : index
    %59 = vector.load %arg4[%c0_46, %c4_47, %c33_48] : memref<1x16x1122xf32, #tpu.memory_space<vmem>>, vector<1x4x1056xf32>
    %60 = vector.shape_cast %59 : vector<1x4x1056xf32> to vector<4x1056xf32>
    %61 = vector.extract_strided_slice %4 {offsets = [28, 0], sizes = [4, 1056], strides = [1, 1]} : vector<36x1056xf32> to vector<4x1056xf32>
    %62 = arith.addf %60, %61 : vector<4x1056xf32>
    %c0_49 = arith.constant 0 : index
    %c4_50 = arith.constant 4 : index
    %c33_51 = arith.constant 33 : index
    %63 = vector.load %arg4[%c0_49, %c4_50, %c33_51] : memref<1x16x1122xf32, #tpu.memory_space<vmem>>, vector<1x4x1056xf32>
    %64 = vector.shape_cast %63 : vector<1x4x1056xf32> to vector<4x1056xf32>
    %65 = vector.shape_cast %62 : vector<4x1056xf32> to vector<1x4x1056xf32>
    tpu.vector_store %arg4[%c0_49, %c4_50, %c33_51], %65 {strides = array<i32>} : memref<1x16x1122xf32, #tpu.memory_space<vmem>>, vector<1x4x1056xf32>,
    %c0_52 = arith.constant 0 : index
    %c0_53 = arith.constant 0 : index
    %c34 = arith.constant 34 : index
    %66 = vector.load %arg4[%c0_52, %c0_53, %c34] : memref<1x16x1122xf32, #tpu.memory_space<vmem>>, vector<1x4x1056xf32>
    %67 = vector.shape_cast %66 : vector<1x4x1056xf32> to vector<4x1056xf32>
    %68 = vector.extract_strided_slice %4 {offsets = [32, 0], sizes = [4, 1056], strides = [1, 1]} : vector<36x1056xf32> to vector<4x1056xf32>
    %69 = arith.addf %67, %68 : vector<4x1056xf32>
    %c0_54 = arith.constant 0 : index
    %c0_55 = arith.constant 0 : index
    %c34_56 = arith.constant 34 : index
    %70 = vector.load %arg4[%c0_54, %c0_55, %c34_56] : memref<1x16x1122xf32, #tpu.memory_space<vmem>>, vector<1x4x1056xf32>
    %71 = vector.shape_cast %70 : vector<1x4x1056xf32> to vector<4x1056xf32>
    %72 = vector.shape_cast %69 : vector<4x1056xf32> to vector<1x4x1056xf32>
    tpu.vector_store %arg4[%c0_54, %c0_55, %c34_56], %72 {strides = array<i32>} : memref<1x16x1122xf32, #tpu.memory_space<vmem>>, vector<1x4x1056xf32>,
    return
  }
  func.func @transform_0(%arg0: i32) -> (i32, i32) {
    %c0_i32 = arith.constant 0 : i32
    %c0_i32_0 = arith.constant 0 : i32
    %c0_i32_1 = arith.constant 0 : i32
    return %c0_i32, %c0_i32_0 : i32, i32
  }
  func.func @transform_1(%arg0: i32) -> (i32, i32, i32) {
    %c0_i32 = arith.constant 0 : i32
    %c0_i32_0 = arith.constant 0 : i32
    %c0_i32_1 = arith.constant 0 : i32
    return %arg0, %c0_i32, %c0_i32_0 : i32, i32, i32
  }
  func.func @transform_2(%arg0: i32) -> (i32, i32) {
    %c0_i32 = arith.constant 0 : i32
    %c0_i32_0 = arith.constant 0 : i32
    %c0_i32_1 = arith.constant 0 : i32
    return %c0_i32, %c0_i32_0 : i32, i32
  }
  func.func @transform_3(%arg0: i32) -> (i32, i32, i32) {
    %c0_i32 = arith.constant 0 : i32
    %c0_i32_0 = arith.constant 0 : i32
    %c0_i32_1 = arith.constant 0 : i32
    return %arg0, %c0_i32, %c0_i32_0 : i32, i32, i32
  }
}

</mosaic_0001>

<bundles_post_ra>
// kernel: forward.2
= control target key start
LH: loop header
LB: loop body
LE: loop exit
PB: predicated region body
PF: predicated region fallthrough
CT: control target
= control target key end

     0   :  { %8 = vsyncpa [#allocation3], 0  ;;  %s1005_s0 = inlined_call_operand.hbm [shape: bf16[72,4], index: 0, kind: input, shape index: {}]   ;;  %s1006_s1 = inlined_call_operand.vmem [shape: f32[2,4,272], index: 1, kind: input, shape index: {}]   ;;  %s1007_s2 = inlined_call_operand.hbm [shape: f32[32,1], index: 2, kind: input, shape index: {}]   ;;  %s1008_s3 = inlined_call_operand.vmem [shape: f32[2,32,306], index: 3, kind: output, shape index: {}]  }
   0x1   :  { %9 = vsyncpa [#allocation5], 0  ;;  %s851_s12 = smov 0  }
   0x2 LB: > { %s125_s15 = sshll.u32 %s1005_s0, 4  ;;  %s860_s16 = sadd.s32 4294967295, %s819_s12   ;;  %s819_s12 = sphi %s851_s12, %s15_s12   ;;  %s126_s15 = int_to_ptr.hbm [resolvable:$true] %s125_s15 }
   0x3   : > { %p655_p0 = scmp.ge.s32.totalorder %s819_s12, 1  ;;  %p114_p1 = scmp.lt.s32.totalorder %s819_s12, 3 }
   0x4   : > { %p721_p2 = scmp.eq.s32.totalorder %s860_s16, 0  ;;  %s821_s18 = smov [#allocation2]  }
   0x5   : > { %p865_p3 = pnand %p655_p0, %p114_p1  ;;  %s127_s19 = sshll.u32 %s821_s18, 4  ;;  %s128_s19 = int_to_ptr.vmem [resolvable:$true] %s127_s19 }
   0x6   : > { %s139_s22 = sshll.u32 %s1007_s2, 4  ;;  %s822_s23 = smov [#allocation4]   ;;  %s140_s22 = int_to_ptr.hbm [resolvable:$true] %s139_s22 }
   0x7   : > { %p714_p4 = pneg %p865_p3  ;;  %s141_s24 = sshll.u32 %s822_s23, 4  ;;  %s142_s24 = int_to_ptr.vmem [resolvable:$true] %s141_s24 }
   0x8   : > { %s823_s25 = smov 64   ;;  %s824_s26 = smov 4  }
   0x9   : > { %p715_p5 = pnand %p721_p2, %p714_p4  ;;  %s825_s27 = smov 128  }
   0xa   : > { %s826_s28 = smov 8   ;;  %165 = sbr.rel (%p865_p3) target bundleno = 339 (0x153), region = 32 }
   0xb   : > { %717 = dma.hbm_to_vmem [thread:$0]  (!%p715_p5), %s126_s15, 576, %s128_s19, [#allocation3], %s823_s25, %s823_s25, %s824_s26  }
   0xc   : > { %720 = dma.hbm_to_vmem [thread:$0]  (!%p715_p5), %s140_s22, 512, %s142_s24, [#allocation5], %s825_s27, %s825_s27, %s826_s28  }
   0xf   : > { %810 = dma.done.wait (%p721_p2), [#allocation3], 576  }
  0x10   : > { %812 = vsyncadd (%p721_p2), [#allocation3], 4294966720 }
  0x11   : > { %814 = dma.done.wait (%p721_p2), [#allocation5], 512  }
  0x12   : > { %816 = vsyncadd (%p721_p2), [#allocation5], 4294966784  ;;  %p195_p6 = scmp.lt.s32.totalorder %s860_s16, 1  ;;  %v827_v0 = vmov 0   ;;  %v379_v3 = vld [vmem:[#allocation4] sm:$0xff]  ;;  %vm270_vm0 = vcmask 1041408  }
  0x13   : > { %743 = vset.pattern.permute.xlu0 %v827_v0  ;;  %744 = vset.pattern.permute.xlu2 %v827_v0  ;;  %v380_v4 = vld [vmem:[#allocation4 + $0x8] sm:$0xff]  ;;  %vm254_vm1 = vcmask 31744   ;;  %v382_v15 = vld [vmem:[#allocation4 + $0x18] sm:$0xff]  ;;  %v381_v16 = vld [vmem:[#allocation4 + $0x10] sm:$0xff]  ;;  %vm405_vm2 = vcmask 408576   ;;  %s828_s10 = smov 1  }
  0x14   : > { %s1011_s16 = smov (!%p195_p6, %s860_s16), 1  ;;  %385 = vperm.xlu0 %743, %v379_v3   ;;  %v698_v13 = vld [vmem:[#allocation2 + $0x8] sm:$0xff]  ;;  %395 = vperm.xlu2 %744, %v381_v16   ;;  %v699_v17 = vld [vmem:[#allocation2 + $0x10] sm:$0xff]  ;;  %v697_v18 = vld [vmem:[#allocation2] sm:$0xff]  ;;  %vm424_vm3 = vcmask 130048   ;;  %s829_s11 = smov 17  }
  0x15   : > { %s704_s29 = smul.u32 12, %s1011_s16  ;;  %v700_v19 = vld [vmem:[#allocation2 + $0x18] sm:$0xff]  ;;  %v230_v20 = vld [vmem:[#allocation2 + $0x20] sm:$0xf]  ;;  %s830_s13 = smov 18   ;;  %vm447_vm4 = vcmask 7168  }
  0x16   : > { %v248_v21 = vunpack.c.l.b16 %v230_v20  ;;  %s705_s6 = smul.u32 96, %s1011_s16  ;;  %vm459_vm5 = vcmask 138240   ;;  %vm456_vm6 = vcmask 1047560   ;;  %vm525_vm7 = vcmask 269312  }
  0x17   : > { %s199_s5 = scalar_lea.vmem %s1006_s1, %s704_s29  ;;  %vm522_vm8 = vcmask 1047688   ;;  %vm562_vm9 = vcmask 146432   ;;  %vm571_vm10 = vcmask 1047696   ;;  %vm574_vm11 = vcmask 277504  }
  0x18   : > { %v206_v1 = vld [vmem:[%s199_s5] sm:$0xff]  ;;  %v207_v2 = vld [vmem:[%s199_s5 + $0x8] sm:$0xf]  ;;  %v253_v22 = vpack.c.b16 %v248_v21, %v248_v21  ;;  %s913_s9 = scalar_lea.vmem %s1008_s3, %s705_s6 }
  0x19   : > { %210 = vst [vmem:[#allocation1] ss:$2 sm:$0xff] %v206_v1 }
  0x1a   : > { %212 = vst [vmem:[#allocation1 + $0x10] ss:$2 sm:$0xff] %v207_v2 }
  0x1c   : > { %390 = vperm.xlu0 %743, %v380_v4  }
  0x20   : > { %v213_v5 = vld.sshfl [vmem:[#allocation1] sm:$0xff pattern:$0x75316420]  ;;  %v214_v6 = vld.sshfl [vmem:[#allocation1 + $0x8] sm:$0xff pattern:$0x75316420] }
  0x21   : > { %v219_v7 = vpack.c.bf16 %v213_v5, %v213_v5  ;;  %v220_v8 = vpack.c.bf16 %v214_v6, %v214_v6  ;;  %v215_v9 = vld.sshfl [vmem:[#allocation1 + $0x10] sm:$0xff pattern:$0x75316420] }
  0x22   : > { %v221_v10 = vpack.c.bf16 %v215_v9, %v215_v9 }
  0x23   : > { %v272_v11 = vsel %vm270_vm0, %v219_v7, 0  ;;  %v275_v12 = vsel %vm270_vm0, %v220_v8, 0 }
  0x24   : > { %701 = vmatpush.bf16.msra.mxu3 %v272_v11  ;;  %702 = vmatpush.bf16.msra.mxu1 %v275_v12  ;;  %v278_v14 = vsel %vm270_vm0, %v221_v10, 0 }
  0x25   : > { %703 = vmatpush.bf16.msra.mxu2 %v278_v14  ;;  %287 = vmatpush.bf16.msra.mxu0 %v272_v11 }
  0x26   : > { %400 = vperm.xlu0 %743, %v382_v15  }
  0x27   : > { %681 = vmatmul.msk.bf16.vlgmr.msra.gmra.mxu3 %vm254_vm1, %v698_v13  ;;  %686 = vmatmul.msk.bf16.vlgmr.msra.gmra.mxu1 %vm254_vm1, %v698_v13 }
  0x28   : > { %691 = vmatmul.msk.bf16.vlgmr.msra.gmra.mxu2 %vm254_vm1, %v698_v13  ;;  %680 = vmatmul.msk.bf16.vlgmr.msra.gmra.mxu0 %vm254_vm1, %v697_v18 }
  0x29   : > { %320 = vmatpush.bf16.msrb.mxu0 %v275_v12 }
  0x2d   : > { %353 = vmatpush.bf16.msra.mxu0 %v278_v14 }
  0x37   : > { %682 = vmatmul.msk.bf16.gmra.mxu3 %vm254_vm1, %v699_v17  ;;  %687 = vmatmul.msk.bf16.gmra.mxu1 %vm254_vm1, %v699_v17 }
  0x38   : > { %692 = vmatmul.msk.bf16.gmra.mxu2 %vm254_vm1, %v699_v17  ;;  %685 = vmatmul.msk.bf16.vlgmr.msrb.gmra.mxu0 %vm254_vm1, %v697_v18 }
  0x47   : > { %683 = vmatmul.msk.bf16.gmra.mxu3 %vm254_vm1, %v700_v19  ;;  %688 = vmatmul.msk.bf16.gmra.mxu1 %vm254_vm1, %v700_v19 }
  0x48   : > { %693 = vmatmul.msk.bf16.gmra.mxu2 %vm254_vm1, %v700_v19  ;;  %690 = vmatmul.msk.bf16.vlgmr.msra.gmra.mxu0 %vm254_vm1, %v697_v18 }
  0x57   : > { %684 = vmatmul.msk.bf16.gmra.mxu3 %vm254_vm1, %v253_v22  ;;  %689 = vmatmul.msk.bf16.gmra.mxu1 %vm254_vm1, %v253_v22 }
  0x58   : > { %694 = vmatmul.msk.bf16.gmra.mxu2 %vm254_vm1, %v253_v22 }
  0x6e   : > { %v915_v23 = vpop.permute.xlu2 %395 }
  0x6f   : > { %412 = vst.msk [vmem:[%s913_s9 + $0x40] sm:$0xff] %vm405_vm2, %v915_v23 }
  0x76   : > { %v463_v31 = vld [vmem:[%s913_s9 + $0x40] sm:$0xff] }
  0x86   : > { %v919_v24 = vpop.permute.xlu0 %385 }
  0x87   : > { %406 = vst.msk [vmem:[%s913_s9 + $0x10] sm:$0xff] %vm405_vm2, %v919_v24 }
  0x8e   : > { %v923_v25 = vpop.permute.xlu0 %390  ;;  %v418_v0 = vld [vmem:[%s913_s9 + $0x10] sm:$0xff] }
  0x8f   : > { %409 = vst.msk [vmem:[%s913_s9 + $0x28] sm:$0xff] %vm405_vm2, %v923_v25 }
  0x96   : > { %v428_v4 = vld [vmem:[%s913_s9 + $0x28] sm:$0xff] }
  0x98   : > { %v401_v26 = vpop.permute.xlu0 %400 }
  0x99   : > { %415 = vst.msk [vmem:[%s913_s9 + $0x58] sm:$0xff] %vm405_vm2, %v401_v26 }
  0xa0   : > { %v472_v38 = vld [vmem:[%s913_s9 + $0x58] sm:$0xff] }
  0xa4   : > { %v327_v27 = vpop.f32.mrf.mxu1 }
  0xa5   : > { %443 = vrot.lane.b32.xlu1 %v327_v27, %s828_s10  ;;  %v289_v46 = vpop.f32.mrf.mxu0 }
  0xa6   : > { %v419_v48 = vadd.f32 %v919_v24, %v289_v46 }
  0xa8   : > { %422 = vst [vmem:[%s913_s9] sm:$0xff] %v419_v48 }
  0xaa   : > { %v294_v28 = vpop.f32.mrf.mxu3 }
  0xab   : > { %v360_v29 = vpop.f32.mrf.mxu2 }
  0xac   : > { %445 = vrot.lane.b32.xlu2 %v360_v29, %s828_s10  ;;  %v930_v30 = vpop.f32.mrf.mxu1 }
  0xad   : > { %441 = vrot.lane.b32.xlu1 %v294_v28, %s828_s10  ;;  %v291_v51 = vpop.f32.mrf.mxu0  ;;  %v465_v14 = vadd.f32 %v915_v23, %v930_v30 }
  0xae   : > { %v952_v53 = vadd.f32 %v923_v25, %v291_v51 }
  0xb0   : > { %432 = vst [vmem:[%s913_s9 + $0x18] sm:$0xff] %v952_v53 }
  0xb2   : > { %v296_v32 = vpop.f32.mrf.mxu3 }
  0xb3   : > { %v935_v33 = vadd.f32 %v915_v23, %v296_v32  ;;  %v362_v34 = vpop.f32.mrf.mxu2 }
  0xb4   : > { %v466_v35 = vadd.f32 %v463_v31, %v362_v34  ;;  %v332_v36 = vpop.f32.mrf.mxu1 }
  0xb5   : > { %467 = vst [vmem:[%s913_s9 + $0x30] sm:$0xff] %v935_v33  ;;  %v474_v37 = vadd.f32 %v401_v26, %v332_v36  ;;  %v322_v60 = vpop.f32.mrf.mxu0 }
  0xb6   : > { %469 = vst.msk [vmem:[%s913_s9 + $0x40] sm:$0xff] %vm424_vm3, %v466_v35 }
  0xb7   : > { %477 = vst [vmem:[%s913_s9 + $0x50] sm:$0xff] %v474_v37 }
  0xba   : > { %v299_v39 = vpop.f32.mrf.mxu3 }
  0xbb   : > { %v473_v40 = vadd.f32 %v401_v26, %v299_v39  ;;  %v365_v41 = vpop.f32.mrf.mxu2  ;;  %v420_v39 = vadd.f32 %v919_v24, %v322_v60 }
  0xbc   : > { %v475_v42 = vadd.f32 %v472_v38, %v365_v41  ;;  %v334_v43 = vpop.f32.mrf.mxu1 }
  0xbd   : > { %476 = vst [vmem:[%s913_s9 + $0x48] sm:$0xff] %v473_v40  ;;  %487 = vrot.lane.b32.xlu2 %v334_v43, %s828_s10  ;;  %v324_v63 = vpop.f32.mrf.mxu0  ;;  %v481_v19 = vld [vmem:[%s913_s9 + $0x40] sm:$0xff] }
  0xbe   : > { %478 = vst.msk [vmem:[%s913_s9 + $0x58] sm:$0xff] %vm424_vm3, %v475_v42  ;;  %v430_v34 = vadd.f32 %v923_v25, %v324_v63 }
  0xc2   : > { %v301_v44 = vpop.f32.mrf.mxu3 }
  0xc3   : > { %v367_v45 = vpop.f32.mrf.mxu2  ;;  %485 = vrot.lane.b32.xlu1 %v301_v44, %s828_s10 }
  0xc4   : > { %489 = vrot.lane.b32.xlu0 %v367_v45, %s828_s10  ;;  %v337_v47 = vpop.f32.mrf.mxu1 }
  0xc5   : > { %v355_v1 = vpop.f32.mrf.mxu0 }
  0xc6   : > { %v421_v2 = vadd.f32 %v418_v0, %v355_v1 }
  0xc8   : > { %425 = vst.msk [vmem:[%s913_s9 + $0x10] sm:$0xff] %vm424_vm3, %v421_v2 }
  0xca   : > { %v304_v49 = vpop.f32.mrf.mxu3 }
  0xcb   : > { %v370_v50 = vpop.f32.mrf.mxu2  ;;  %510 = vrot.lane.b32.xlu1 %v337_v47, %s829_s11 }
  0xcc   : > { %512 = vrot.lane.b32.xlu2 %v370_v50, %s829_s11  ;;  %508 = vrot.lane.b32.xlu0 %v304_v49, %s829_s11  ;;  %v339_v52 = vpop.f32.mrf.mxu1 }
  0xcd   : > { %v357_v3 = vpop.f32.mrf.mxu0 }
  0xce   : > { %v431_v5 = vadd.f32 %v428_v4, %v357_v3 }
  0xcf   : > { %v437_v6 = vld [vmem:[%s913_s9 + $0x10] sm:$0xff] }
  0xd0   : > { %434 = vst.msk [vmem:[%s913_s9 + $0x28] sm:$0xff] %vm424_vm3, %v431_v5 }
  0xd2   : > { %v306_v54 = vpop.f32.mrf.mxu3 }
  0xd3   : > { %v372_v55 = vpop.f32.mrf.mxu2  ;;  %533 = vrot.lane.b32.xlu1 %v306_v54, %s829_s11 }
  0xd4   : > { %535 = vrot.lane.b32.xlu2 %v339_v52, %s829_s11  ;;  %537 = vrot.lane.b32.xlu0 %v372_v55, %s829_s11  ;;  %v342_v56 = vpop.f32.mrf.mxu1 }
  0xd7   : > { %v529_v40 = vld [vmem:[%s913_s9 + $0x28] sm:$0xff] }
  0xda   : > { %v309_v57 = vpop.f32.mrf.mxu3 }
  0xdb   : > { %v375_v58 = vpop.f32.mrf.mxu2  ;;  %556 = vrot.lane.b32.xlu1 %v309_v57, %s830_s13 }
  0xdc   : > { %560 = vrot.lane.b32.xlu0 %v375_v58, %s830_s13  ;;  %v344_v59 = vpop.f32.mrf.mxu1  ;;  %558 = vrot.lane.b32.xlu2 %v342_v56, %s830_s13 }
  0xe2   : > { %v311_v61 = vpop.f32.mrf.mxu3 }
  0xe3   : > { %v377_v62 = vpop.f32.mrf.mxu2 }
 0x106   : > { %v446_v7 = vpop.permute.xlu2 %445 }
 0x117   : > { %v444_v8 = vpop.permute.xlu1 %443  ;;  %v488_v13 = vpop.permute.xlu2 %487 }
 0x118   : > { %v449_v9 = vsel %vm447_vm4, %v444_v8, %v446_v7 }
 0x119   : > { %v455_v10 = vadd.f32 %v449_v9, %v437_v6 }
 0x11b   : > { %460 = vst.msk [vmem:[%s913_s9 + $0x10] sm:$0xff] %vm459_vm5, %v455_v10 }
 0x11f   : > { %v442_v11 = vpop.permute.xlu1 %441 }
 0x120   : > { %v453_v12 = vadd.f32 %v442_v11, %v419_v48  ;;  %v448_v43 = vsel %vm447_vm4, %v442_v11, %v444_v8 }
 0x121   : > { %v454_v45 = vadd.f32 %v448_v43, %v420_v39 }
 0x122   : > { %457 = vst.msk [vmem:[%s913_s9] sm:$0xff] %vm456_vm6, %v453_v12  ;;  %v504_v27 = vld [vmem:[%s913_s9 + $0x10] sm:$0xff] }
 0x126   : > { %v513_v26 = vpop.permute.xlu2 %512 }
 0x129   : > { %v502_v30 = vld [vmem:[%s913_s9] sm:$0xff] }
 0x135   : > { %v486_v15 = vpop.permute.xlu1 %485 }
 0x136   : > { %v490_v16 = vpop.permute.xlu0 %489  ;;  %v491_v17 = vsel %vm447_vm4, %v486_v15, %v488_v13  ;;  %v496_v18 = vadd.f32 %v486_v15, %v935_v33  ;;  %v536_v33 = vpop.permute.xlu2 %535 }
 0x137   : > { %v492_v20 = vsel %vm447_vm4, %v488_v13, %v490_v16  ;;  %v497_v21 = vadd.f32 %v491_v17, %v465_v14 }
 0x138   : > { %v498_v22 = vadd.f32 %v492_v20, %v481_v19  ;;  %499 = vst.msk [vmem:[%s913_s9 + $0x30] sm:$0xff] %vm456_vm6, %v496_v18 }
 0x139   : > { %500 = vst [vmem:[%s913_s9 + $0x38] sm:$0xff] %v497_v21 }
 0x13a   : > { %501 = vst.msk [vmem:[%s913_s9 + $0x40] sm:$0xff] %vm459_vm5, %v498_v22 }
 0x13d   : > { %v511_v23 = vpop.permute.xlu1 %510 }
 0x13e   : > { %v515_v28 = vsel %vm459_vm5, %v511_v23, %v513_v26  ;;  %v509_v29 = vpop.permute.xlu0 %508  ;;  %v559_v24 = vpop.permute.xlu2 %558 }
 0x13f   : > { %v521_v31 = vadd.f32 %v515_v28, %v504_v27  ;;  %v519_v32 = vadd.f32 %v509_v29, %v502_v30  ;;  %v514_v25 = vsel %vm459_vm5, %v509_v29, %v511_v23 }
 0x140   : > { %v520_v46 = vadd.f32 %v514_v25, %v454_v45 }
 0x141   : > { %526 = vst.msk [vmem:[%s913_s9 + $0x10] sm:$0xff] %vm525_vm7, %v521_v31 }
 0x142   : > { %523 = vst.msk [vmem:[%s913_s9] sm:$0xff] %vm522_vm8, %v519_v32 }
 0x145   : > { %v534_v35 = vpop.permute.xlu1 %533 }
 0x146   : > { %v538_v36 = vpop.permute.xlu0 %537  ;;  %v539_v37 = vsel %vm459_vm5, %v534_v35, %v536_v33  ;;  %v544_v38 = vadd.f32 %v534_v35, %v952_v53 }
 0x147   : > { %v540_v41 = vsel %vm459_vm5, %v536_v33, %v538_v36  ;;  %v545_v42 = vadd.f32 %v539_v37, %v430_v34 }
 0x148   : > { %v546_v44 = vadd.f32 %v540_v41, %v529_v40  ;;  %547 = vst.msk [vmem:[%s913_s9 + $0x18] sm:$0xff] %vm522_vm8, %v544_v38  ;;  %v552_v52 = vld [vmem:[%s913_s9 + $0x10] sm:$0xff] }
 0x149   : > { %548 = vst [vmem:[%s913_s9 + $0x20] sm:$0xff] %v545_v42  ;;  %v550_v48 = vld [vmem:[%s913_s9] sm:$0xff] }
 0x14a   : > { %549 = vst.msk [vmem:[%s913_s9 + $0x28] sm:$0xff] %vm525_vm7, %v546_v44 }
 0x14d   : > { %v557_v47 = vpop.permute.xlu1 %556 }
 0x14e   : > { %v561_v49 = vpop.permute.xlu0 %560  ;;  %v563_v50 = vsel %vm562_vm9, %v557_v47, %v559_v24  ;;  %v568_v51 = vadd.f32 %v557_v47, %v550_v48 }
 0x14f   : > { %v564_v53 = vsel %vm562_vm9, %v559_v24, %v561_v49  ;;  %v569_v54 = vadd.f32 %v563_v50, %v520_v46 }
 0x150   : > { %v570_v55 = vadd.f32 %v564_v53, %v552_v52  ;;  %572 = vst.msk [vmem:[%s913_s9] sm:$0xff] %vm571_vm10, %v568_v51 }
 0x151   : > { %573 = vst [vmem:[%s913_s9 + $0x8] sm:$0xff] %v569_v54 }
 0x152   : > { %575 = vst.msk [vmem:[%s913_s9 + $0x10] sm:$0xff] %vm574_vm11, %v570_v55 }
 0x153 PF: > { %s15_s12 = sadd.s32 1, %s819_s12  }
 0x154   : > { %p12_p7 = scmp.ge.s32.totalorder %s15_s12, 4  }
 0x156   :  { %14 = sbr.rel (!%p12_p7) target bundleno = 2 (0x2), region = 72 }
 0x15b   :  { %597 = vsyncpa [#allocation3], 1 }
 0x15c   :  { %599 = vsyncpa [#allocation3 + $0x1], 1 }
 0x15d   :  { %600 = vsyncpa [#allocation5], 1 }

// kernel: forward.3
= control target key start
LH: loop header
LB: loop body
LE: loop exit
PB: predicated region body
PF: predicated region fallthrough
CT: control target
= control target key end

     0   :  { %s1102_s12 = smov 0   ;;  %s1500_s0 = inlined_call_operand.vmem [shape: bf16[36,8], index: 0, kind: input, shape index: {}]   ;;  %s1501_s1 = inlined_call_operand.vmem [shape: f32[2,8,1056], index: 1, kind: input, shape index: {}]   ;;  %s1502_s2 = inlined_call_operand.vmem [shape: f32[16,1], index: 2, kind: input, shape index: {}]   ;;  %s1503_s3 = inlined_call_operand.vmem [shape: f32[2,16,1122], index: 3, kind: output, shape index: {}]  }
   0x1 LB: > { %s1007_s13 = sadd.s32 4294967295, %s1076_s12   ;;  %p1011_p0 = scmp.ge.s32.totalorder %s1076_s12, 1  ;;  %s1076_s12 = sphi %s1102_s12, %s13_s12  }
   0x2   : > { %p137_p1 = scmp.lt.s32.totalorder %s1076_s12, 3 }
   0x4   : > { %p138_p2 = pnand %p1011_p0, %p137_p1 }
   0x5   : > { %p161_p3 = scmp.lt.s32.totalorder (!%p138_p2), %s1007_s13, 1  ;;  %s1079_s5 = smov (!%p138_p2), 1  }
   0x6   : > { %141 = sbr.rel (%p138_p2) target bundleno = 395 (0x18b), region = 32  ;;  %s1080_s6 = smov (!%p138_p2), 34  }
   0x7   : > { %s1081_s7 = smov (!%p138_p2), 33  }
   0xb   : > { %v453_v0 = vld [vmem:[%s1502_s2] sm:$0xff]  ;;  %v1078_v1 = vmov 0   ;;  %s1505_s13 = smov (!%p161_p3, %s1007_s13), 1  ;;  %v194_v2 = vld [vmem:[%s1500_s0 + $0x10] sm:$0x3]  ;;  %v454_v3 = vld [vmem:[%s1502_s2 + $0x8] sm:$0xff] }
   0xc   : > { %1069 = vset.pattern.permute.xlu0 %v1078_v1  ;;  %s1055_s16 = smul.u32 72, %s1505_s13  ;;  %vm218_vm0 = vcmask 1043456   ;;  %v204_v5 = vunpack.c.l.b16 %v194_v2  ;;  %v1051_v19 = vld [vmem:[%s1500_s0] sm:$0xff]  ;;  %v1052_v20 = vld [vmem:[%s1500_s0 + $0x8] sm:$0xff]  ;;  %vm208_vm1 = vcmask 64512   ;;  %vm473_vm2 = vcmask 801792  }
   0xd   : > { %457 = vperm.xlu0 %1069, %v453_v0   ;;  %s1056_s28 = smul.u32 144, %s1505_s13  ;;  %vm510_vm3 = vcmask 257024   ;;  %vm538_vm4 = vcmask 261124   ;;  %vm603_vm5 = vcmask 1043464   ;;  %vm867_vm6 = vcmask 1047820  }
   0xe   : > { %s1122_s21 = scalar_lea.vmem %s1501_s1, %s1055_s16  ;;  %v207_v24 = vpack.c.b16 %v204_v5, %v204_v5  ;;  %vm576_vm7 = vcmask 7168   ;;  %vm838_vm8 = vcmask 1043720   ;;  %vm941_vm9 = vcmask 1043728  }
   0xf   : > { %v172_v4 = vld [vmem:[%s1122_s21] sm:$0xff]  ;;  %v173_v6 = vld [vmem:[%s1122_s21 + $0x8] sm:$0xff]  ;;  %v175_v7 = vld [vmem:[%s1122_s21 + $0x18] sm:$0xff]  ;;  %s1182_s4 = scalar_lea.vmem %s1503_s3, %s1056_s28  ;;  %vm811_vm10 = vcmask 269312   ;;  %vm914_vm11 = vcmask 277504   ;;  %vm612_vm12 = vcmask 265216  }
  0x10   : > { %v181_v8 = vpack.c.bf16 %v172_v4, %v172_v4  ;;  %v182_v9 = vpack.c.bf16 %v173_v6, %v173_v6  ;;  %v184_v10 = vpack.c.bf16 %v175_v7, %v175_v7  ;;  %v174_v11 = vld [vmem:[%s1122_s21 + $0x10] sm:$0xff]  ;;  %v176_v12 = vld [vmem:[%s1122_s21 + $0x20] sm:$0xff]  ;;  %v177_v13 = vld [vmem:[%s1122_s21 + $0x28] sm:$0xff]  ;;  %vm847_vm13 = vcmask 527360  }
  0x11   : > { %v183_v14 = vpack.c.bf16 %v174_v11, %v174_v11  ;;  %v185_v15 = vpack.c.bf16 %v176_v12, %v176_v12  ;;  %v186_v16 = vpack.c.bf16 %v177_v13, %v177_v13  ;;  %v180_v17 = vld [vmem:[%s1122_s21 + $0x40] sm:$0xff]  ;;  %v179_v29 = vld [vmem:[%s1122_s21 + $0x38] sm:$0xff]  ;;  %v178_v32 = vld [vmem:[%s1122_s21 + $0x30] sm:$0xff]  ;;  %vm876_vm14 = vcmask 531460  }
  0x12   : > { %v220_v18 = vsel %vm218_vm0, %v181_v8, 0  ;;  %v223_v21 = vsel %vm218_vm0, %v182_v9, 0  ;;  %v229_v22 = vsel %vm218_vm0, %v184_v10, 0  ;;  %v189_v23 = vpack.c.bf16 %v180_v17, %v180_v17 }
  0x13   : > { %253 = vmatpush.bf16.msra.mxu0 %v220_v18  ;;  %1053 = vmatpush.bf16.msra.mxu1 %v220_v18  ;;  %v226_v25 = vsel %vm218_vm0, %v183_v14, 0  ;;  %v232_v26 = vsel %vm218_vm0, %v185_v15, 0  ;;  %v235_v27 = vsel %vm218_vm0, %v186_v16, 0  ;;  %v188_v30 = vpack.c.bf16 %v179_v29, %v179_v29 }
  0x14   : > { %1054 = vmatpush.bf16.msra.mxu2 %v220_v18  ;;  %322 = vmatpush.bf16.msra.mxu3 %v229_v22  ;;  %v244_v28 = vsel %vm218_vm0, %v189_v23, 0  ;;  %v187_v33 = vpack.c.bf16 %v178_v32, %v178_v32  ;;  %vm950_vm15 = vcmask 535552  }
  0x15   : > { %462 = vperm.xlu0 %1069, %v454_v3   ;;  %v241_v31 = vsel %vm218_vm0, %v188_v30, 0 }
  0x16   : > { %1022 = vmatmul.msk.bf16.vlgmr.msra.gmra.mxu0 %vm208_vm1, %v1051_v19  ;;  %1023 = vmatmul.msk.bf16.vlgmr.msra.gmra.mxu1 %vm208_vm1, %v1052_v20  ;;  %v238_v34 = vsel %vm218_vm0, %v187_v33, 0 }
  0x17   : > { %276 = vmatpush.bf16.msrb.mxu1 %v223_v21  ;;  %1024 = vmatmul.msk.bf16.vlgmr.msra.gmra.mxu2 %vm208_vm1, %v207_v24 }
  0x18   : > { %299 = vmatpush.bf16.msrb.mxu2 %v226_v25  ;;  %345 = vmatpush.bf16.msrb.mxu0 %v232_v26 }
  0x19   : > { %1031 = vmatmul.msk.bf16.vlgmr.msra.gmra.mxu3 %vm208_vm1, %v1051_v19 }
  0x1a   : > { %414 = vmatpush.bf16.msrb.mxu3 %v241_v31 }
  0x1b   : > { %368 = vmatpush.bf16.msra.mxu1 %v235_v27 }
  0x1c   : > { %437 = vmatpush.bf16.msra.mxu0 %v244_v28  ;;  %391 = vmatpush.bf16.msra.mxu2 %v238_v34 }
  0x26   : > { %1025 = vmatmul.msk.bf16.vlgmr.msrb.gmra.mxu1 %vm208_vm1, %v1051_v19  ;;  %1034 = vmatmul.msk.bf16.vlgmr.msrb.gmra.mxu0 %vm208_vm1, %v1051_v19 }
  0x27   : > { %1028 = vmatmul.msk.bf16.vlgmr.msrb.gmra.mxu2 %vm208_vm1, %v1051_v19 }
  0x29   : > { %1032 = vmatmul.msk.bf16.gmra.mxu3 %vm208_vm1, %v1052_v20 }
  0x36   : > { %1026 = vmatmul.msk.bf16.gmra.mxu1 %vm208_vm1, %v1052_v20  ;;  %1035 = vmatmul.msk.bf16.gmra.mxu0 %vm208_vm1, %v1052_v20 }
  0x37   : > { %1029 = vmatmul.msk.bf16.gmra.mxu2 %vm208_vm1, %v1052_v20 }
  0x39   : > { %1033 = vmatmul.msk.bf16.gmra.mxu3 %vm208_vm1, %v207_v24 }
  0x46   : > { %1027 = vmatmul.msk.bf16.gmra.mxu1 %vm208_vm1, %v207_v24  ;;  %1036 = vmatmul.msk.bf16.gmra.mxu0 %vm208_vm1, %v207_v24 }
  0x47   : > { %1030 = vmatmul.msk.bf16.gmra.mxu2 %vm208_vm1, %v207_v24 }
  0x49   : > { %1043 = vmatmul.msk.bf16.vlgmr.msrb.gmra.mxu3 %vm208_vm1, %v1051_v19 }
  0x56   : > { %1037 = vmatmul.msk.bf16.vlgmr.msra.gmra.mxu1 %vm208_vm1, %v1051_v19  ;;  %1046 = vmatmul.msk.bf16.vlgmr.msra.gmra.mxu0 %vm208_vm1, %v1051_v19 }
  0x57   : > { %1040 = vmatmul.msk.bf16.vlgmr.msra.gmra.mxu2 %vm208_vm1, %v1051_v19 }
  0x59   : > { %1044 = vmatmul.msk.bf16.gmra.mxu3 %vm208_vm1, %v1052_v20 }
  0x66   : > { %1038 = vmatmul.msk.bf16.gmra.mxu1 %vm208_vm1, %v1052_v20  ;;  %1047 = vmatmul.msk.bf16.gmra.mxu0 %vm208_vm1, %v1052_v20 }
  0x67   : > { %1041 = vmatmul.msk.bf16.gmra.mxu2 %vm208_vm1, %v1052_v20 }
  0x69   : > { %1045 = vmatmul.msk.bf16.gmra.mxu3 %vm208_vm1, %v207_v24 }
  0x76   : > { %1039 = vmatmul.msk.bf16.gmra.mxu1 %vm208_vm1, %v207_v24  ;;  %1048 = vmatmul.msk.bf16.gmra.mxu0 %vm208_vm1, %v207_v24 }
  0x77   : > { %1042 = vmatmul.msk.bf16.gmra.mxu2 %vm208_vm1, %v207_v24 }
  0x7f   : > { %v1184_v35 = vpop.permute.xlu0 %457 }
  0x80   : > { %465 = vst [vmem:[%s1182_s4] sm:$0xff] %v1184_v35 }
  0x81   : > { %466 = vst [vmem:[%s1182_s4 + $0x8] sm:$0xff] %v1184_v35 }
  0x82   : > { %467 = vst [vmem:[%s1182_s4 + $0x10] sm:$0xff] %v1184_v35 }
  0x83   : > { %468 = vst [vmem:[%s1182_s4 + $0x18] sm:$0xff] %v1184_v35 }
  0x84   : > { %469 = vst [vmem:[%s1182_s4 + $0x20] sm:$0xff] %v1184_v35 }
  0x85   : > { %470 = vst [vmem:[%s1182_s4 + $0x28] sm:$0xff] %v1184_v35 }
  0x86   : > { %471 = vst [vmem:[%s1182_s4 + $0x30] sm:$0xff] %v1184_v35 }
  0x87   : > { %472 = vst [vmem:[%s1182_s4 + $0x38] sm:$0xff] %v1184_v35  ;;  %v1202_v36 = vpop.permute.xlu0 %462  ;;  %v484_v37 = vld [vmem:[%s1182_s4] sm:$0xf]  ;;  %v512_v38 = vld [vmem:[%s1182_s4] sm:$0xf0] }
  0x88   : > { %475 = vst [vmem:[%s1182_s4 + $0x48] sm:$0xff] %v1202_v36  ;;  %v485_v57 = vld [vmem:[%s1182_s4 + $0x8] sm:$0xf]  ;;  %v513_v58 = vld [vmem:[%s1182_s4 + $0x8] sm:$0xf0] }
  0x89   : > { %476 = vst [vmem:[%s1182_s4 + $0x50] sm:$0xff] %v1202_v36  ;;  %v486_v8 = vld [vmem:[%s1182_s4 + $0x10] sm:$0xf]  ;;  %v514_v9 = vld [vmem:[%s1182_s4 + $0x10] sm:$0xf0] }
  0x8a   : > { %477 = vst [vmem:[%s1182_s4 + $0x58] sm:$0xff] %v1202_v36  ;;  %v487_v47 = vld [vmem:[%s1182_s4 + $0x18] sm:$0xf]  ;;  %v515_v48 = vld [vmem:[%s1182_s4 + $0x18] sm:$0xf0] }
  0x8b   : > { %478 = vst [vmem:[%s1182_s4 + $0x60] sm:$0xff] %v1202_v36  ;;  %v488_v59 = vld [vmem:[%s1182_s4 + $0x20] sm:$0xf]  ;;  %v516_v61 = vld [vmem:[%s1182_s4 + $0x20] sm:$0xf0] }
  0x8c   : > { %479 = vst [vmem:[%s1182_s4 + $0x68] sm:$0xff] %v1202_v36 }
  0x8d   : > { %480 = vst [vmem:[%s1182_s4 + $0x70] sm:$0xff] %v1202_v36 }
  0x8e   : > { %481 = vst [vmem:[%s1182_s4 + $0x78] sm:$0xff] %v1202_v36 }
  0x8f   : > { %482 = vst [vmem:[%s1182_s4 + $0x80] sm:$0xff] %v1202_v36  ;;  %v659_v41 = vld [vmem:[%s1182_s4 + $0x48] sm:$0xf0]  ;;  %v614_v50 = vld [vmem:[%s1182_s4 + $0x48] sm:$0xf] }
  0x90   : > { %v615_v14 = vld [vmem:[%s1182_s4 + $0x50] sm:$0xf]  ;;  %v660_v29 = vld [vmem:[%s1182_s4 + $0x50] sm:$0xf0]  ;;  %474 = vst.msk [vmem:[%s1182_s4 + $0x40] sm:$0xff] %vm473_vm2, %v1184_v35 }
  0x91   : > { %v616_v26 = vld [vmem:[%s1182_s4 + $0x58] sm:$0xf]  ;;  %483 = vst.msk [vmem:[%s1182_s4 + $0x88] sm:$0xff] %vm473_vm2, %v1202_v36 }
  0x92   : > { %v617_v4 = vld [vmem:[%s1182_s4 + $0x60] sm:$0xf]  ;;  %v662_v20 = vld [vmem:[%s1182_s4 + $0x60] sm:$0xf0] }
  0x93   : > { %v255_v39 = vpop.f32.mrf.mxu0  ;;  %v260_v40 = vpop.f32.mrf.mxu1  ;;  %v618_v16 = vld [vmem:[%s1182_s4 + $0x68] sm:$0xf]  ;;  %v663_v31 = vld [vmem:[%s1182_s4 + $0x68] sm:$0xf0] }
  0x94   : > { %v493_v42 = vadd.f32 %v484_v37, %v255_v39  ;;  %v521_v43 = vadd.f32 %v512_v38, %v255_v39  ;;  %v677_v44 = vrot.slane %v260_v40, 4 }
  0x96   : > { %502 = vst [vmem:[%s1182_s4] sm:$0xf] %v493_v42  ;;  %v695_v45 = vadd.f32 %v677_v44, %v659_v41  ;;  %722 = vrot.lane.b32.xlu2 %v677_v44, %s1079_s5  ;;  %v661_v41 = vld [vmem:[%s1182_s4 + $0x58] sm:$0xf0] }
  0x97   : > { %530 = vst [vmem:[%s1182_s4] sm:$0xf0] %v521_v43 }
  0x98   : > { %704 = vst [vmem:[%s1182_s4 + $0x48] sm:$0xf0] %v695_v45 }
  0x9a   : > { %v265_v46 = vpop.f32.mrf.mxu2 }
  0x9b   : > { %v257_v49 = vpop.f32.mrf.mxu0  ;;  %v262_v51 = vpop.f32.mrf.mxu1 }
  0x9c   : > { %v623_v52 = vrot.slane %v257_v49, 4  ;;  %558 = vrot.lane.b32.xlu1 %v257_v49, %s1079_s5  ;;  %v324_v53 = vpop.f32.mrf.mxu3 }
  0x9d   : > { %v496_v54 = vadd.f32 %v487_v47, %v324_v53  ;;  %v524_v55 = vadd.f32 %v515_v48, %v324_v53 }
  0x9e   : > { %v641_v56 = vadd.f32 %v623_v52, %v614_v50  ;;  %896 = vrot.lane.b32.xlu2 %v265_v46, %s1080_s6  ;;  %v491_v50 = vld [vmem:[%s1182_s4 + $0x38] sm:$0xf] }
  0x9f   : > { %505 = vst [vmem:[%s1182_s4 + $0x18] sm:$0xf] %v496_v54 }
  0xa0   : > { %650 = vst [vmem:[%s1182_s4 + $0x48] sm:$0xf] %v641_v56 }
  0xa1   : > { %533 = vst [vmem:[%s1182_s4 + $0x18] sm:$0xf0] %v524_v55 }
  0xa2   : > { %v267_v60 = vpop.f32.mrf.mxu2 }
  0xa3   : > { %v278_v62 = vpop.f32.mrf.mxu1  ;;  %v347_v63 = vpop.f32.mrf.mxu0 }
  0xa4   : > { %v494_v0 = vadd.f32 %v485_v57, %v278_v62  ;;  %v522_v1 = vadd.f32 %v513_v58, %v278_v62  ;;  %v497_v2 = vadd.f32 %v488_v59, %v347_v63  ;;  %v326_v3 = vpop.f32.mrf.mxu3  ;;  %v525_v5 = vadd.f32 %v516_v61, %v347_v63  ;;  %v489_v57 = vld [vmem:[%s1182_s4 + $0x28] sm:$0xf]  ;;  %v517_v58 = vld [vmem:[%s1182_s4 + $0x28] sm:$0xf0]  ;;  %v492_v59 = vld [vmem:[%s1182_s4 + $0x40] sm:$0xf] }
  0xa5   : > { %v626_v6 = vrot.slane %v326_v3, 4  ;;  %v520_v61 = vld [vmem:[%s1182_s4 + $0x40] sm:$0xf0] }
  0xa6   : > { %503 = vst [vmem:[%s1182_s4 + $0x8] sm:$0xf] %v494_v0  ;;  %793 = vrot.lane.b32.xlu2 %v262_v51, %s1081_s7  ;;  %v519_v51 = vld [vmem:[%s1182_s4 + $0x38] sm:$0xf0] }
  0xa7   : > { %531 = vst [vmem:[%s1182_s4 + $0x8] sm:$0xf0] %v522_v1  ;;  %v644_v7 = vadd.f32 %v626_v6, %v617_v4  ;;  %v621_v4 = vld [vmem:[%s1182_s4 + $0x80] sm:$0xf] }
  0xa8   : > { %506 = vst [vmem:[%s1182_s4 + $0x20] sm:$0xf] %v497_v2 }
  0xa9   : > { %534 = vst [vmem:[%s1182_s4 + $0x20] sm:$0xf0] %v525_v5 }
  0xaa   : > { %v301_v10 = vpop.f32.mrf.mxu2  ;;  %653 = vst [vmem:[%s1182_s4 + $0x60] sm:$0xf] %v644_v7 }
  0xab   : > { %v495_v11 = vadd.f32 %v486_v8, %v301_v10  ;;  %v523_v12 = vadd.f32 %v514_v9, %v301_v10  ;;  %v280_v13 = vpop.f32.mrf.mxu1  ;;  %v349_v15 = vpop.f32.mrf.mxu0  ;;  %v490_v8 = vld [vmem:[%s1182_s4 + $0x30] sm:$0xf]  ;;  %v518_v9 = vld [vmem:[%s1182_s4 + $0x30] sm:$0xf0] }
  0xac   : > { %v624_v17 = vrot.slane %v280_v13, 4  ;;  %v627_v18 = vrot.slane %v349_v15, 4  ;;  %560 = vrot.lane.b32.xlu1 %v280_v13, %s1079_s5  ;;  %566 = vrot.lane.b32.xlu0 %v349_v15, %s1079_s5  ;;  %v329_v19 = vpop.f32.mrf.mxu3 }
  0xad   : > { %504 = vst [vmem:[%s1182_s4 + $0x10] sm:$0xf] %v495_v11  ;;  %v680_v21 = vrot.slane %v329_v19, 4 }
  0xae   : > { %532 = vst [vmem:[%s1182_s4 + $0x10] sm:$0xf0] %v523_v12  ;;  %v642_v22 = vadd.f32 %v624_v17, %v615_v14  ;;  %v645_v23 = vadd.f32 %v627_v18, %v618_v16  ;;  %564 = vrot.lane.b32.xlu2 %v326_v3, %s1079_s5  ;;  %v619_v14 = vld [vmem:[%s1182_s4 + $0x70] sm:$0xf]  ;;  %v622_v16 = vld [vmem:[%s1182_s4 + $0x88] sm:$0xf] }
  0xaf   : > { %v698_v24 = vadd.f32 %v680_v21, %v662_v20  ;;  %v666_v20 = vld [vmem:[%s1182_s4 + $0x80] sm:$0xf0] }
  0xb0   : > { %651 = vst [vmem:[%s1182_s4 + $0x50] sm:$0xf] %v642_v22 }
  0xb1   : > { %654 = vst [vmem:[%s1182_s4 + $0x68] sm:$0xf] %v645_v23 }
  0xb2   : > { %v303_v25 = vpop.f32.mrf.mxu2  ;;  %707 = vst [vmem:[%s1182_s4 + $0x60] sm:$0xf0] %v698_v24 }
  0xb3   : > { %v625_v27 = vrot.slane %v303_v25, 4  ;;  %v283_v28 = vpop.f32.mrf.mxu1  ;;  %v352_v30 = vpop.f32.mrf.mxu0 }
  0xb4   : > { %v678_v32 = vrot.slane %v283_v28, 4  ;;  %v681_v33 = vrot.slane %v352_v30, 4  ;;  %v331_v34 = vpop.f32.mrf.mxu3 }
  0xb5   : > { %v643_v37 = vadd.f32 %v625_v27, %v616_v26  ;;  %v620_v26 = vld [vmem:[%s1182_s4 + $0x78] sm:$0xf] }
  0xb6   : > { %v696_v38 = vadd.f32 %v678_v32, %v660_v29  ;;  %v699_v39 = vadd.f32 %v681_v33, %v663_v31  ;;  %728 = vrot.lane.b32.xlu2 %v680_v21, %s1079_s5  ;;  %724 = vrot.lane.b32.xlu0 %v678_v32, %s1079_s5  ;;  %v664_v29 = vld [vmem:[%s1182_s4 + $0x70] sm:$0xf0]  ;;  %v667_v31 = vld [vmem:[%s1182_s4 + $0x88] sm:$0xf0] }
  0xb7   : > { %652 = vst [vmem:[%s1182_s4 + $0x58] sm:$0xf] %v643_v37 }
  0xb8   : > { %705 = vst [vmem:[%s1182_s4 + $0x50] sm:$0xf0] %v696_v38 }
  0xb9   : > { %708 = vst [vmem:[%s1182_s4 + $0x68] sm:$0xf0] %v699_v39 }
  0xba   : > { %v306_v40 = vpop.f32.mrf.mxu2 }
  0xbb   : > { %v679_v42 = vrot.slane %v306_v40, 4  ;;  %v285_v43 = vpop.f32.mrf.mxu1  ;;  %v354_v44 = vpop.f32.mrf.mxu0 }
  0xbc   : > { %v1272_v35 = vpop.f32.mrf.mxu3 }
  0xbd   : > { %v697_v45 = vadd.f32 %v679_v42, %v661_v41  ;;  %726 = vrot.lane.b32.xlu1 %v679_v42, %s1079_s5  ;;  %v665_v41 = vld [vmem:[%s1182_s4 + $0x78] sm:$0xf0] }
  0xbe   : > { %562 = vrot.lane.b32.xlu2 %v303_v25, %s1079_s5  ;;  %730 = vrot.lane.b32.xlu0 %v681_v33, %s1079_s5 }
  0xbf   : > { %706 = vst [vmem:[%s1182_s4 + $0x58] sm:$0xf0] %v697_v45 }
  0xc2   : > { %v308_v36 = vpop.f32.mrf.mxu2 }
  0xc3   : > { %v288_v46 = vpop.f32.mrf.mxu1  ;;  %v1278_v47 = vpop.f32.mrf.mxu0 }
  0xc4   : > { %v336_v48 = vpop.f32.mrf.mxu3 }
  0xc5   : > { %797 = vrot.lane.b32.xlu1 %v308_v36, %s1081_s7  ;;  %v713_v48 = vld [vmem:[%s1182_s4 + $0x48] sm:$0xf] }
  0xc6   : > { %795 = vrot.lane.b32.xlu0 %v285_v43, %s1081_s7  ;;  %799 = vrot.lane.b32.xlu2 %v331_v34, %s1081_s7 }
  0xca   : > { %v311_v49 = vpop.f32.mrf.mxu2 }
  0xcb   : > { %v290_v52 = vpop.f32.mrf.mxu1  ;;  %v359_v53 = vpop.f32.mrf.mxu0 }
  0xcc   : > { %v416_v54 = vpop.f32.mrf.mxu3 }
  0xcd   : > { %v500_v55 = vadd.f32 %v491_v50, %v416_v54  ;;  %v528_v56 = vadd.f32 %v519_v51, %v416_v54  ;;  %900 = vrot.lane.b32.xlu1 %v311_v49, %s1080_s6 }
  0xce   : > { %801 = vrot.lane.b32.xlu0 %v354_v44, %s1081_s7 }
  0xcf   : > { %509 = vst [vmem:[%s1182_s4 + $0x38] sm:$0xf] %v500_v55 }
  0xd0   : > { %537 = vst [vmem:[%s1182_s4 + $0x38] sm:$0xf0] %v528_v56 }
  0xd2   : > { %v313_v60 = vpop.f32.mrf.mxu2 }
  0xd3   : > { %v370_v62 = vpop.f32.mrf.mxu1  ;;  %v439_v63 = vpop.f32.mrf.mxu0 }
  0xd4   : > { %v498_v0 = vadd.f32 %v489_v57, %v370_v62  ;;  %v526_v1 = vadd.f32 %v517_v58, %v370_v62  ;;  %v501_v2 = vadd.f32 %v492_v59, %v439_v63  ;;  %v418_v3 = vpop.f32.mrf.mxu3  ;;  %v529_v5 = vadd.f32 %v520_v61, %v439_v63  ;;  %v849_v59 = vld [vmem:[%s1182_s4] sm:$0xf0] }
  0xd5   : > { %v630_v6 = vrot.slane %v418_v3, 4 }
  0xd6   : > { %507 = vst [vmem:[%s1182_s4 + $0x28] sm:$0xf] %v498_v0  ;;  %898 = vrot.lane.b32.xlu0 %v288_v46, %s1080_s6 }
  0xd7   : > { %535 = vst [vmem:[%s1182_s4 + $0x28] sm:$0xf0] %v526_v1  ;;  %v648_v7 = vadd.f32 %v630_v6, %v621_v4  ;;  %v543_v4 = vld [vmem:[%s1182_s4 + $0x18] sm:$0xf] }
  0xd8   : > { %511 = vst.msk [vmem:[%s1182_s4 + $0x40] sm:$0xf] %vm510_vm3, %v501_v2 }
  0xd9   : > { %539 = vst.msk [vmem:[%s1182_s4 + $0x40] sm:$0xf0] %vm538_vm4, %v529_v5 }
  0xda   : > { %v393_v10 = vpop.f32.mrf.mxu2  ;;  %657 = vst [vmem:[%s1182_s4 + $0x80] sm:$0xf] %v648_v7 }
  0xdb   : > { %v499_v11 = vadd.f32 %v490_v8, %v393_v10  ;;  %v527_v12 = vadd.f32 %v518_v9, %v393_v10  ;;  %v372_v13 = vpop.f32.mrf.mxu1  ;;  %v441_v15 = vpop.f32.mrf.mxu0  ;;  %v541_v9 = vld [vmem:[%s1182_s4 + $0x8] sm:$0xf]  ;;  %v542_v10 = vld [vmem:[%s1182_s4 + $0x10] sm:$0xf] }
  0xdc   : > { %v628_v17 = vrot.slane %v372_v13, 4  ;;  %v631_v18 = vrot.slane %v441_v15, 4  ;;  %568 = vrot.lane.b32.xlu1 %v372_v13, %s1079_s5  ;;  %v421_v19 = vpop.f32.mrf.mxu3  ;;  %v544_v13 = vld [vmem:[%s1182_s4 + $0x20] sm:$0xf] }
  0xdd   : > { %508 = vst [vmem:[%s1182_s4 + $0x30] sm:$0xf] %v499_v11  ;;  %v684_v21 = vrot.slane %v421_v19, 4 }
  0xde   : > { %536 = vst [vmem:[%s1182_s4 + $0x30] sm:$0xf0] %v527_v12  ;;  %v646_v22 = vadd.f32 %v628_v17, %v619_v14  ;;  %v649_v23 = vadd.f32 %v631_v18, %v622_v16  ;;  %572 = vrot.lane.b32.xlu0 %v418_v3, %s1079_s5 }
  0xdf   : > { %v702_v24 = vadd.f32 %v684_v21, %v666_v20 }
  0xe0   : > { %655 = vst [vmem:[%s1182_s4 + $0x70] sm:$0xf] %v646_v22 }
  0xe1   : > { %658 = vst.msk [vmem:[%s1182_s4 + $0x88] sm:$0xf] %vm510_vm3, %v649_v23 }
  0xe2   : > { %v395_v25 = vpop.f32.mrf.mxu2  ;;  %711 = vst [vmem:[%s1182_s4 + $0x80] sm:$0xf0] %v702_v24 }
  0xe3   : > { %v629_v27 = vrot.slane %v395_v25, 4  ;;  %v375_v28 = vpop.f32.mrf.mxu1  ;;  %570 = vrot.lane.b32.xlu2 %v395_v25, %s1079_s5  ;;  %v444_v30 = vpop.f32.mrf.mxu0  ;;  %v715_v25 = vld [vmem:[%s1182_s4 + $0x58] sm:$0xf] }
  0xe4   : > { %v682_v32 = vrot.slane %v375_v28, 4  ;;  %574 = vrot.lane.b32.xlu1 %v441_v15, %s1079_s5  ;;  %v685_v33 = vrot.slane %v444_v30, 4  ;;  %v423_v34 = vpop.f32.mrf.mxu3 }
  0xe5   : > { %v647_v37 = vadd.f32 %v629_v27, %v620_v26  ;;  %v716_v26 = vld [vmem:[%s1182_s4 + $0x60] sm:$0xf] }
  0xe6   : > { %v700_v38 = vadd.f32 %v682_v32, %v664_v29  ;;  %736 = vrot.lane.b32.xlu0 %v684_v21, %s1079_s5  ;;  %v703_v39 = vadd.f32 %v685_v33, %v667_v31  ;;  %v714_v21 = vld [vmem:[%s1182_s4 + $0x50] sm:$0xf] }
  0xe7   : > { %656 = vst [vmem:[%s1182_s4 + $0x78] sm:$0xf] %v647_v37 }
  0xe8   : > { %709 = vst [vmem:[%s1182_s4 + $0x70] sm:$0xf0] %v700_v38 }
  0xe9   : > { %712 = vst.msk [vmem:[%s1182_s4 + $0x88] sm:$0xf0] %vm538_vm4, %v703_v39 }
  0xea   : > { %v398_v40 = vpop.f32.mrf.mxu2 }
  0xeb   : > { %v683_v42 = vrot.slane %v398_v40, 4  ;;  %v377_v43 = vpop.f32.mrf.mxu1  ;;  %v446_v44 = vpop.f32.mrf.mxu0  ;;  %v852_v40 = vld [vmem:[%s1182_s4 + $0x18] sm:$0xf0] }
  0xec   : > { %732 = vrot.lane.b32.xlu1 %v682_v32, %s1079_s5  ;;  %v426_v45 = vpop.f32.mrf.mxu3  ;;  %v717_v32 = vld [vmem:[%s1182_s4 + $0x68] sm:$0xf] }
  0xed   : > { %v701_v36 = vadd.f32 %v683_v42, %v665_v41  ;;  %734 = vrot.lane.b32.xlu2 %v683_v42, %s1079_s5 }
  0xee   : > { %807 = vrot.lane.b32.xlu0 %v423_v34, %s1081_s7 }
  0xef   : > { %710 = vst [vmem:[%s1182_s4 + $0x78] sm:$0xf0] %v701_v36 }
  0xf0   : > { %v1330_v46 = vpop.permute.xlu2 %722 }
  0xf1   : > { %v757_v49 = vadd.f32 %v1330_v46, %v713_v48 }
  0xf2   : > { %v400_v50 = vpop.f32.mrf.mxu2 }
  0xf3   : > { %766 = vst.msk [vmem:[%s1182_s4 + $0x48] sm:$0xf] %vm603_vm5, %v757_v49  ;;  %v380_v51 = vpop.f32.mrf.mxu1  ;;  %v449_v52 = vpop.f32.mrf.mxu0  ;;  %v850_v49 = vld [vmem:[%s1182_s4 + $0x8] sm:$0xf0] }
  0xf4   : > { %738 = vrot.lane.b32.xlu1 %v685_v33, %s1079_s5  ;;  %v428_v53 = vpop.f32.mrf.mxu3 }
  0xf5   : > { %805 = vrot.lane.b32.xlu2 %v400_v50, %s1081_s7 }
  0xf6   : > { %904 = vrot.lane.b32.xlu0 %v1278_v47, %s1080_s6 }
  0xf8   : > { %v1340_v54 = vpop.permute.xlu2 %896 }
  0xfa   : > { %v403_v55 = vpop.f32.mrf.mxu2 }
  0xfb   : > { %v382_v56 = vpop.f32.mrf.mxu1  ;;  %v451_v57 = vpop.f32.mrf.mxu0 }
  0xfc   : > { %803 = vrot.lane.b32.xlu1 %v377_v43, %s1081_s7 }
  0xfd   : > { %902 = vrot.lane.b32.xlu2 %v1272_v35, %s1080_s6  ;;  %v540_v35 = vld [vmem:[%s1182_s4] sm:$0xf] }
  0xfe   : > { %910 = vrot.lane.b32.xlu0 %v426_v45, %s1080_s6 }
 0x100   : > { %v1346_v58 = vpop.permute.xlu2 %793 }
 0x101   : > { %v858_v47 = vadd.f32 %v849_v59, %v1346_v58  ;;  %v853_v59 = vld [vmem:[%s1182_s4 + $0x20] sm:$0xf0] }
 0x102   : > { %v405_v60 = vpop.f32.mrf.mxu2 }
 0x103   : > { %868 = vst.msk [vmem:[%s1182_s4] sm:$0xf0] %vm867_vm6, %v858_v47 }
 0x104   : > { %809 = vrot.lane.b32.xlu1 %v446_v44, %s1081_s7 }
 0x105   : > { %908 = vrot.lane.b32.xlu2 %v403_v55, %s1080_s6 }
 0x108   : > { %v565_v61 = vpop.permute.xlu2 %564 }
 0x10c   : > { %906 = vrot.lane.b32.xlu1 %v380_v51, %s1080_s6 }
 0x10e   : > { %v559_v62 = vpop.permute.xlu1 %558 }
 0x10f   : > { %v594_v63 = vadd.f32 %v559_v62, %v540_v35 }
 0x110   : > { %v729_v0 = vpop.permute.xlu2 %728 }
 0x111   : > { %604 = vst.msk [vmem:[%s1182_s4] sm:$0xf] %vm603_vm5, %v594_v63 }
 0x114   : > { %912 = vrot.lane.b32.xlu1 %v449_v52, %s1080_s6  ;;  %v851_v52 = vld [vmem:[%s1182_s4 + $0x10] sm:$0xf0] }
 0x118   : > { %v775_v1 = vld [vmem:[%s1182_s4] sm:$0xf]  ;;  %v563_v2 = vpop.permute.xlu2 %562 }
 0x119   : > { %v829_v3 = vadd.f32 %v1346_v58, %v775_v1  ;;  %v579_v5 = vsel %vm576_vm7, %v563_v2, %v565_v61 }
 0x11a   : > { %v597_v6 = vadd.f32 %v579_v5, %v543_v4 }
 0x11b   : > { %839 = vst.msk [vmem:[%s1182_s4] sm:$0xf] %vm838_vm8, %v829_v3 }
 0x11c   : > { %607 = vst [vmem:[%s1182_s4 + $0x18] sm:$0xf] %v597_v6 }
 0x11e   : > { %v561_v7 = vpop.permute.xlu1 %560  ;;  %v1364_v8 = vpop.permute.xlu0 %566 }
 0x11f   : > { %v577_v11 = vsel %vm576_vm7, %v559_v62, %v561_v7  ;;  %v578_v12 = vsel %vm576_vm7, %v561_v7, %v563_v2  ;;  %v580_v14 = vsel %vm576_vm7, %v565_v61, %v1364_v8 }
 0x120   : > { %v595_v15 = vadd.f32 %v577_v11, %v541_v9  ;;  %v596_v16 = vadd.f32 %v578_v12, %v542_v10  ;;  %v598_v17 = vadd.f32 %v580_v14, %v544_v13  ;;  %v800_v37 = vpop.permute.xlu2 %799  ;;  %v545_v9 = vld [vmem:[%s1182_s4 + $0x28] sm:$0xf]  ;;  %v546_v10 = vld [vmem:[%s1182_s4 + $0x30] sm:$0xf] }
 0x122   : > { %v878_v18 = vld [vmem:[%s1182_s4] sm:$0xf]  ;;  %605 = vst [vmem:[%s1182_s4 + $0x8] sm:$0xf] %v595_v15  ;;  %v547_v15 = vld [vmem:[%s1182_s4 + $0x38] sm:$0xf] }
 0x123   : > { %v932_v19 = vadd.f32 %v1340_v54, %v878_v18  ;;  %606 = vst [vmem:[%s1182_s4 + $0x10] sm:$0xf] %v596_v16  ;;  %v778_v39 = vld [vmem:[%s1182_s4 + $0x18] sm:$0xf] }
 0x124   : > { %608 = vst [vmem:[%s1182_s4 + $0x20] sm:$0xf] %v598_v17 }
 0x125   : > { %942 = vst.msk [vmem:[%s1182_s4] sm:$0xf] %vm941_vm9, %v932_v19 }
 0x128   : > { %v725_v20 = vpop.permute.xlu0 %724 }
 0x129   : > { %v740_v22 = vsel %vm576_vm7, %v1330_v46, %v725_v20  ;;  %v776_v45 = vld [vmem:[%s1182_s4 + $0x8] sm:$0xf] }
 0x12a   : > { %v758_v23 = vadd.f32 %v740_v22, %v714_v21  ;;  %v777_v36 = vld [vmem:[%s1182_s4 + $0x10] sm:$0xf] }
 0x12c   : > { %767 = vst [vmem:[%s1182_s4 + $0x50] sm:$0xf] %v758_v23 }
 0x12f   : > { %v727_v24 = vpop.permute.xlu1 %726 }
 0x130   : > { %v741_v27 = vsel %vm576_vm7, %v725_v20, %v727_v24  ;;  %v742_v28 = vsel %vm576_vm7, %v727_v24, %v729_v0  ;;  %v1387_v29 = vpop.permute.xlu0 %730 }
 0x131   : > { %v759_v30 = vadd.f32 %v741_v27, %v715_v25  ;;  %v760_v31 = vadd.f32 %v742_v28, %v716_v26  ;;  %v743_v33 = vsel %vm576_vm7, %v729_v0, %v1387_v29  ;;  %v720_v26 = vld [vmem:[%s1182_s4 + $0x80] sm:$0xf] }
 0x132   : > { %v761_v34 = vadd.f32 %v743_v33, %v717_v32  ;;  %v719_v32 = vld [vmem:[%s1182_s4 + $0x78] sm:$0xf] }
 0x133   : > { %768 = vst [vmem:[%s1182_s4 + $0x58] sm:$0xf] %v759_v30 }
 0x134   : > { %769 = vst [vmem:[%s1182_s4 + $0x60] sm:$0xf] %v760_v31  ;;  %v718_v31 = vld [vmem:[%s1182_s4 + $0x70] sm:$0xf] }
 0x135   : > { %770 = vst [vmem:[%s1182_s4 + $0x68] sm:$0xf] %v761_v34 }
 0x137   : > { %v798_v38 = vpop.permute.xlu1 %797 }
 0x138   : > { %v814_v41 = vsel %vm811_vm10, %v798_v38, %v800_v37  ;;  %v796_v42 = vpop.permute.xlu0 %795 }
 0x139   : > { %v832_v43 = vadd.f32 %v814_v41, %v778_v39  ;;  %v861_v44 = vadd.f32 %v852_v40, %v814_v41  ;;  %v812_v46 = vsel %vm811_vm10, %v1346_v58, %v796_v42  ;;  %v813_v48 = vsel %vm811_vm10, %v796_v42, %v798_v38  ;;  %v779_v58 = vld [vmem:[%s1182_s4 + $0x20] sm:$0xf]  ;;  %v856_v41 = vld [vmem:[%s1182_s4 + $0x38] sm:$0xf0] }
 0x13a   : > { %v830_v50 = vadd.f32 %v812_v46, %v776_v45  ;;  %v831_v51 = vadd.f32 %v813_v48, %v777_v36  ;;  %v859_v53 = vadd.f32 %v850_v49, %v812_v46  ;;  %v860_v55 = vadd.f32 %v851_v52, %v813_v48  ;;  %v721_v45 = vld [vmem:[%s1182_s4 + $0x88] sm:$0xf] }
 0x13b   : > { %842 = vst [vmem:[%s1182_s4 + $0x18] sm:$0xf] %v832_v43 }
 0x13c   : > { %871 = vst [vmem:[%s1182_s4 + $0x18] sm:$0xf0] %v861_v44 }
 0x13d   : > { %840 = vst [vmem:[%s1182_s4 + $0x8] sm:$0xf] %v830_v50  ;;  %v571_v56 = vpop.permute.xlu2 %570 }
 0x13e   : > { %841 = vst [vmem:[%s1182_s4 + $0x10] sm:$0xf] %v831_v51 }
 0x13f   : > { %869 = vst [vmem:[%s1182_s4 + $0x8] sm:$0xf0] %v859_v53  ;;  %v901_v35 = vpop.permute.xlu1 %900 }
 0x140   : > { %870 = vst [vmem:[%s1182_s4 + $0x10] sm:$0xf0] %v860_v55  ;;  %v1411_v57 = vpop.permute.xlu0 %801 }
 0x141   : > { %v815_v47 = vsel %vm811_vm10, %v800_v37, %v1411_v57 }
 0x142   : > { %v833_v60 = vadd.f32 %v815_v47, %v779_v58  ;;  %v862_v61 = vadd.f32 %v853_v59, %v815_v47  ;;  %v881_v21 = vld [vmem:[%s1182_s4 + $0x18] sm:$0xf]  ;;  %v854_v58 = vld [vmem:[%s1182_s4 + $0x28] sm:$0xf0] }
 0x144   : > { %843 = vst [vmem:[%s1182_s4 + $0x20] sm:$0xf] %v833_v60  ;;  %v879_v0 = vld [vmem:[%s1182_s4 + $0x8] sm:$0xf]  ;;  %v855_v60 = vld [vmem:[%s1182_s4 + $0x30] sm:$0xf0] }
 0x145   : > { %872 = vst [vmem:[%s1182_s4 + $0x20] sm:$0xf0] %v862_v61  ;;  %v880_v1 = vld [vmem:[%s1182_s4 + $0x10] sm:$0xf] }
 0x147   : > { %v735_v62 = vpop.permute.xlu2 %734 }
 0x148   : > { %v899_v63 = vpop.permute.xlu0 %898 }
 0x149   : > { %v915_v2 = vsel %vm914_vm11, %v1340_v54, %v899_v63  ;;  %v916_v3 = vsel %vm914_vm11, %v899_v63, %v901_v35 }
 0x14a   : > { %v933_v4 = vadd.f32 %v915_v2, %v879_v0  ;;  %v934_v5 = vadd.f32 %v916_v3, %v880_v1 }
 0x14b   : > { %v882_v49 = vld [vmem:[%s1182_s4 + $0x20] sm:$0xf] }
 0x14c   : > { %943 = vst [vmem:[%s1182_s4 + $0x8] sm:$0xf] %v933_v4 }
 0x14d   : > { %944 = vst [vmem:[%s1182_s4 + $0x10] sm:$0xf] %v934_v5  ;;  %v857_v5 = vld [vmem:[%s1182_s4 + $0x40] sm:$0xf0] }
 0x14e   : > { %v569_v6 = vpop.permute.xlu1 %568 }
 0x14f   : > { %v1426_v7 = vpop.permute.xlu2 %805  ;;  %v581_v11 = vsel %vm576_vm7, %v1364_v8, %v569_v6  ;;  %v582_v54 = vsel %vm576_vm7, %v569_v6, %v571_v56  ;;  %v548_v8 = vld [vmem:[%s1182_s4 + $0x40] sm:$0xf] }
 0x150   : > { %v599_v12 = vadd.f32 %v581_v11, %v545_v9  ;;  %v600_v13 = vadd.f32 %v582_v54, %v546_v10  ;;  %v573_v14 = vpop.permute.xlu0 %572 }
 0x151   : > { %v583_v16 = vsel %vm576_vm7, %v571_v56, %v573_v14 }
 0x152   : > { %609 = vst [vmem:[%s1182_s4 + $0x28] sm:$0xf] %v599_v12  ;;  %v601_v17 = vadd.f32 %v583_v16, %v547_v15 }
 0x153   : > { %610 = vst [vmem:[%s1182_s4 + $0x30] sm:$0xf] %v600_v13 }
 0x154   : > { %611 = vst [vmem:[%s1182_s4 + $0x38] sm:$0xf] %v601_v17 }
 0x156   : > { %v575_v18 = vpop.permute.xlu1 %574 }
 0x157   : > { %v903_v19 = vpop.permute.xlu2 %902  ;;  %v584_v20 = vsel %vm576_vm7, %v573_v14, %v575_v18 }
 0x158   : > { %v917_v22 = vsel %vm914_vm11, %v901_v35, %v903_v19  ;;  %v602_v23 = vadd.f32 %v584_v20, %v548_v8  ;;  %v737_v24 = vpop.permute.xlu0 %736 }
 0x159   : > { %v935_v25 = vadd.f32 %v917_v22, %v881_v21  ;;  %v746_v27 = vsel %vm576_vm7, %v735_v62, %v737_v24  ;;  %v780_v55 = vld [vmem:[%s1182_s4 + $0x28] sm:$0xf] }
 0x15a   : > { %613 = vst.msk [vmem:[%s1182_s4 + $0x40] sm:$0xf] %vm612_vm12, %v602_v23  ;;  %v764_v28 = vadd.f32 %v746_v27, %v720_v26  ;;  %v781_v56 = vld [vmem:[%s1182_s4 + $0x30] sm:$0xf] }
 0x15b   : > { %945 = vst [vmem:[%s1182_s4 + $0x18] sm:$0xf] %v935_v25  ;;  %v782_v40 = vld [vmem:[%s1182_s4 + $0x38] sm:$0xf] }
 0x15c   : > { %773 = vst [vmem:[%s1182_s4 + $0x80] sm:$0xf] %v764_v28 }
 0x15e   : > { %v733_v30 = vpop.permute.xlu1 %732 }
 0x15f   : > { %v744_v33 = vsel %vm576_vm7, %v1387_v29, %v733_v30  ;;  %v745_v34 = vsel %vm576_vm7, %v733_v30, %v735_v62  ;;  %v909_v53 = vpop.permute.xlu2 %908 }
 0x160   : > { %v762_v37 = vadd.f32 %v744_v33, %v718_v31  ;;  %v763_v38 = vadd.f32 %v745_v34, %v719_v32  ;;  %v808_v39 = vpop.permute.xlu0 %807 }
 0x161   : > { %v818_v42 = vsel %vm811_vm10, %v1426_v7, %v808_v39  ;;  %v783_v4 = vld [vmem:[%s1182_s4 + $0x40] sm:$0xf] }
 0x162   : > { %771 = vst [vmem:[%s1182_s4 + $0x70] sm:$0xf] %v762_v37  ;;  %v836_v43 = vadd.f32 %v818_v42, %v782_v40  ;;  %v865_v44 = vadd.f32 %v856_v41, %v818_v42 }
 0x163   : > { %772 = vst [vmem:[%s1182_s4 + $0x78] sm:$0xf] %v763_v38 }
 0x164   : > { %846 = vst [vmem:[%s1182_s4 + $0x38] sm:$0xf] %v836_v43 }
 0x165   : > { %875 = vst [vmem:[%s1182_s4 + $0x38] sm:$0xf0] %v865_v44 }
 0x166   : > { %v739_v29 = vpop.permute.xlu1 %738 }
 0x167   : > { %v747_v36 = vsel %vm576_vm7, %v737_v24, %v739_v29 }
 0x168   : > { %v765_v46 = vadd.f32 %v747_v36, %v721_v45  ;;  %v905_v48 = vpop.permute.xlu0 %904 }
 0x169   : > { %v918_v50 = vsel %vm914_vm11, %v903_v19, %v905_v48 }
 0x16a   : > { %774 = vst.msk [vmem:[%s1182_s4 + $0x88] sm:$0xf] %vm612_vm12, %v765_v46  ;;  %v936_v51 = vadd.f32 %v918_v50, %v882_v49 }
 0x16b   : > { %v885_v1 = vld [vmem:[%s1182_s4 + $0x38] sm:$0xf] }
 0x16c   : > { %946 = vst [vmem:[%s1182_s4 + $0x20] sm:$0xf] %v936_v51 }
 0x16e   : > { %v804_v52 = vpop.permute.xlu1 %803 }
 0x16f   : > { %v816_v59 = vsel %vm811_vm10, %v1411_v57, %v804_v52  ;;  %v817_v47 = vsel %vm811_vm10, %v804_v52, %v1426_v7 }
 0x170   : > { %v834_v61 = vadd.f32 %v816_v59, %v780_v55  ;;  %v835_v35 = vadd.f32 %v817_v47, %v781_v56  ;;  %v863_v62 = vadd.f32 %v854_v58, %v816_v59  ;;  %v911_v63 = vpop.permute.xlu0 %910  ;;  %v864_v0 = vadd.f32 %v855_v60, %v817_v47 }
 0x171   : > { %v921_v2 = vsel %vm914_vm11, %v909_v53, %v911_v63 }
 0x172   : > { %844 = vst [vmem:[%s1182_s4 + $0x28] sm:$0xf] %v834_v61  ;;  %v939_v3 = vadd.f32 %v921_v2, %v885_v1 }
 0x173   : > { %845 = vst [vmem:[%s1182_s4 + $0x30] sm:$0xf] %v835_v35 }
 0x174   : > { %873 = vst [vmem:[%s1182_s4 + $0x28] sm:$0xf0] %v863_v62 }
 0x175   : > { %874 = vst [vmem:[%s1182_s4 + $0x30] sm:$0xf0] %v864_v0 }
 0x176   : > { %949 = vst [vmem:[%s1182_s4 + $0x38] sm:$0xf] %v939_v3  ;;  %v810_v57 = vpop.permute.xlu1 %809 }
 0x177   : > { %v819_v6 = vsel %vm811_vm10, %v808_v39, %v810_v57 }
 0x178   : > { %v837_v7 = vadd.f32 %v819_v6, %v783_v4  ;;  %v866_v9 = vadd.f32 %v857_v5, %v819_v6 }
 0x179   : > { %v883_v11 = vld [vmem:[%s1182_s4 + $0x28] sm:$0xf] }
 0x17a   : > { %848 = vst.msk [vmem:[%s1182_s4 + $0x40] sm:$0xf] %vm847_vm13, %v837_v7  ;;  %v884_v54 = vld [vmem:[%s1182_s4 + $0x30] sm:$0xf] }
 0x17b   : > { %877 = vst.msk [vmem:[%s1182_s4 + $0x40] sm:$0xf0] %vm876_vm14, %v866_v9 }
 0x17e   : > { %v907_v10 = vpop.permute.xlu1 %906 }
 0x17f   : > { %v919_v12 = vsel %vm914_vm11, %v905_v48, %v907_v10  ;;  %v920_v13 = vsel %vm914_vm11, %v907_v10, %v909_v53 }
 0x180   : > { %v937_v14 = vadd.f32 %v919_v12, %v883_v11  ;;  %v938_v15 = vadd.f32 %v920_v13, %v884_v54 }
 0x181   : > { %v886_v17 = vld [vmem:[%s1182_s4 + $0x40] sm:$0xf] }
 0x182   : > { %947 = vst [vmem:[%s1182_s4 + $0x28] sm:$0xf] %v937_v14 }
 0x183   : > { %948 = vst [vmem:[%s1182_s4 + $0x30] sm:$0xf] %v938_v15 }
 0x186   : > { %v913_v16 = vpop.permute.xlu1 %912 }
 0x187   : > { %v922_v18 = vsel %vm914_vm11, %v911_v63, %v913_v16 }
 0x188   : > { %v940_v19 = vadd.f32 %v922_v18, %v886_v17 }
 0x18a   : > { %951 = vst.msk [vmem:[%s1182_s4 + $0x40] sm:$0xf] %vm950_vm15, %v940_v19 }
 0x18b PF: > { %s13_s12 = sadd.s32 1, %s1076_s12  }
 0x18c   : > { %p10_p4 = scmp.ge.s32.totalorder %s13_s12, 4  }
 0x18e   :  { %12 = sbr.rel (!%p10_p4) target bundleno = 1 (0x1), region = 62 }

</bundles_post_ra>
